<compile_context>
chip_gen: v5e
topology: v5e:2x2
jax: 0.10.0
libtpu: 0.0.40
codegen_flags: <defaults>
</compile_context>

<pallas_src>
import functools

import jax
import jax.numpy as jnp
from jax.experimental import pallas as pl
from jax.experimental.pallas import tpu as pltpu


def _round_up(n, m):
    return ((n + m - 1) // m) * m


# ----------------------- fused dw(x) + rhs Pallas kernel ----------------------

def _modl_rhs_kernel(lam_ref, x_ref, atb_ref, mask_ref, *rest, Wp, n_layers):
    """Per batch-tile: rhs = x - dw(x) + lam*Atb in padded, lane-flattened layout."""
    out_ref = rest[-1]
    wb_refs = rest[:-1]                      # (w0, b0, w1, b1, ...)

    lam = lam_ref[0]                         # SMEM scalar (learned parameter)
    x = x_ref[...]                           # (C, Lb) f32, zero outside interiors
    atb = atb_ref[...]                       # (C, Lb) f32
    mask = mask_ref[...]                     # (1, Lb) f32 interior mask
    Lb = x.shape[1]

    # Tap order k = ky*3 + kx matches the host-side weight packing.
    shifts = [(ky - 1) * Wp + (kx - 1) for ky in range(3) for kx in range(3)]

    # Hoist the interior-mask sublane broadcast once (JAX does not CSE
    # broadcast_in_dim; re-used for every hidden layer).
    feat = wb_refs[0].shape[0] if n_layers > 1 else 0
    mask_feat = jnp.broadcast_to(mask, (feat, Lb)) if feat else None

    act = x
    for li in range(n_layers):
        w = wb_refs[2 * li][...]             # (Cout, 9*Cin) f32, VMEM resident
        bias = wb_refs[2 * li + 1][...]      # (Cout, 1) f32
        cout = w.shape[0]

        # Stack the 9 lane-shifted tap views into a single (9*Cin, Lb) operand.
        # result[:, i] = act[:, (i + s) mod Lb]  ==  roll by (-s); wrapped lanes
        # only land on masked (pad-ring / tail) output positions.
        taps = jnp.concatenate(
            [act if (s % Lb) == 0
             else pltpu.roll(act, shift=(-s) % Lb, axis=1)
             for s in shifts],
            axis=0)

        # One MXU matmul per layer: (Cout, 9*Cin) @ (9*Cin, Lb), f32 accumulate.
        acc = jnp.dot(w, taps, preferred_element_type=jnp.float32) + bias

        if li < n_layers - 1:
            m = mask_feat if cout == feat else jnp.broadcast_to(mask, (cout, Lb))
            act = jnp.maximum(acc, 0.0) * m  # ReLU + re-zero pad ring and tails
        else:
            # Final layer feeds only the epilogue; the wrapper crops pad/tail
            # positions, so no re-mask is needed here (invariant documented above).
            act = acc

    # Fused epilogue: z = dw(x);  rhs = (x - z) + lam * Atb
    out_ref[...] = x - act + lam * atb


def modl_rhs_fused(x, atb, lam, dw_params):
    """Fused Pallas computation of rhs = x - dw(x) + lam * Atb (NCHW f32)."""
    n, c, h, w = x.shape
    hp, wp = h + 2, w + 2
    l = hp * wp
    lp = _round_up(l, 128)                   # per-image lane-dense slot width

    # Batch tile per grid step: lanes become b_tile * lp (amortizes per-step
    # overhead / weight reuse; remaining steps feed the pipeline / both TCs).
    b_tile = max(d for d in (1, 2, 4, 8) if n % d == 0)

    # TODO(synk): at realistic MRI resolutions, fold the pad/flatten (and the
    # crop) into the kernel via a zero-initialized VMEM scratch and row-tile H
    # with a 1-row halo (v7x 64 MiB VMEM); at this size the wrapper pads are
    # negligible.
    def pad_flat(a):                         # (n,c,h,w) -> (c, n*lp)
        a = jnp.pad(a.astype(jnp.float32), ((0, 0), (0, 0), (1, 1), (1, 1)))
        a = a.reshape(n, c, l)
        a = jnp.pad(a, ((0, 0), (0, 0), (0, lp - l)))
        return jnp.transpose(a, (1, 0, 2)).reshape(c, n * lp)

    xp = pad_flat(x)                         # (c, n*lp)
    atbp = pad_flat(atb)

    interior = jnp.zeros((hp, wp), jnp.float32).at[1:-1, 1:-1].set(1.0)
    interior = jnp.pad(interior.reshape(l), (0, lp - l))
    maskb = jnp.tile(interior, b_tile)[None, :]              # (1, b_tile*lp)

    wb_arrays, wb_specs = [], []
    for (wgt, bias) in dw_params:
        cout, cin = int(wgt.shape[0]), int(wgt.shape[1])
        # (Cout, Cin, 3, 3) -> (Cout, 9*Cin), tap-major (k = ky*3+kx, then Cin)
        w2 = jnp.transpose(wgt, (0, 2, 3, 1)).reshape(cout, 9 * cin)
        wb_arrays += [w2.astype(jnp.float32),
                      bias.reshape(cout, 1).astype(jnp.float32)]
        wb_specs += [pl.BlockSpec((cout, 9 * cin), lambda i: (0, 0)),
                     pl.BlockSpec((cout, 1), lambda i: (0, 0))]

    img_spec = pl.BlockSpec((c, b_tile * lp), lambda i: (0, i))
    mask_spec = pl.BlockSpec((1, b_tile * lp), lambda i: (0, 0))
    smem_spec = pl.BlockSpec(memory_space=pltpu.MemorySpace.SMEM)

    kern = functools.partial(_modl_rhs_kernel, Wp=wp, n_layers=len(dw_params))

    flops = 2 * n * lp * sum(9 * int(wg.shape[1]) * int(wg.shape[0])
                             for (wg, _) in dw_params)
    bytes_accessed = 4 * (3 * c * n * lp
                          + sum(int(wg.size) + int(bs.size)
                                for (wg, bs) in dw_params))
    cost = pl.CostEstimate(flops=flops, transcendentals=0,
                           bytes_accessed=int(bytes_accessed))

    # TODO(synk): on v7x, switch the batch axis to pltpu.CORE_PARALLEL (or
    # pl.core_map over create_tensorcore_mesh) to split grid steps across the
    # two TensorCores; plain "parallel" is kept here for portability.
    rhs_p = pl.pallas_call(
        kern,
        out_shape=jax.ShapeDtypeStruct((c, n * lp), jnp.float32),
        grid=(n // b_tile,),
        in_specs=[smem_spec, img_spec, img_spec, mask_spec] + wb_specs,
        out_specs=img_spec,
        compiler_params=pltpu.CompilerParams(
            dimension_semantics=("parallel",),
            vmem_limit_bytes=48 * 1024 * 1024),
        cost_estimate=cost,
    )(jnp.reshape(jnp.asarray(lam, jnp.float32), (1,)), xp, atbp, maskb,
      *wb_arrays)

    # Drop per-image lane tails + the 1px pad ring -> back to (n, c, h, w).
    rhs = rhs_p.reshape(c, n, lp)[:, :, :l].reshape(c, n, hp, wp)[:, :, 1:-1, 1:-1]
    return jnp.transpose(rhs, (1, 0, 2, 3))


# --------------------------------- dwblock -----------------------------------

def init_dwblock_params(key, input_channels, features, output_channels,
                        number_of_layers):
    dims = [input_channels] + [features] * (number_of_layers - 1) + [output_channels]
    params = []
    for i in range(number_of_layers):
        key, kw, kb = jax.random.split(key, 3)
        w = 0.1 * jax.random.normal(kw, (dims[i + 1], dims[i], 3, 3), jnp.float32)
        b = 0.01 * jax.random.normal(kb, (dims[i + 1],), jnp.float32)
        params.append((w, b))
    return params


def dw_reference(params, x):
    """Plain-JAX dwblock (used only to validate the fused Pallas kernel)."""
    out = x
    nl = len(params)
    for i, (w, b) in enumerate(params):
        out = jax.lax.conv_general_dilated(
            out, w, window_strides=(1, 1), padding=((1, 1), (1, 1)),
            dimension_numbers=("NCHW", "OIHW", "NCHW"))
        out = out + b.reshape(1, -1, 1, 1)
        if i < nl - 1:
            out = jnp.maximum(out, 0.0)
    return out


# ------------------------------ SENSE operator --------------------------------

def _r2c(x):   # (N, 2, H, W) f32 -> (N, H, W) c64
    return (x[:, 0] + 1j * x[:, 1]).astype(jnp.complex64)


def _c2r(z):   # (N, H, W) c64 -> (N, 2, H, W) f32
    return jnp.stack([jnp.real(z), jnp.imag(z)], axis=1).astype(jnp.float32)


class SenseMRIOperator:
    """A = M F C.  inv solves (I + lam A^H A) x = rhs with fixed-iteration CG."""

    def __init__(self, cg_iters=6):
        self.cg_iters = cg_iters

    def AtA(self, img, csm, mask):
        coil = csm * img[:, None, :, :]
        ksp = jnp.fft.fft2(coil, norm="ortho") * mask[:, None, :, :]
        im = jnp.fft.ifft2(ksp, norm="ortho")
        return jnp.sum(jnp.conj(csm) * im, axis=1)

    def At(self, ksp, csm, mask):
        im = jnp.fft.ifft2(ksp * mask[:, None, :, :], norm="ortho")
        return jnp.sum(jnp.conj(csm) * im, axis=1)

    def inv(self, x0, rhs, lam, csm, mask):
        # TODO(synk): the FFT-based normal-operator CG has no clean Pallas
        # equivalent; this data-consistency solve stays in plain JAX (jnp.fft).
        x = _r2c(x0)
        b = _r2c(rhs)

        def M(v):
            return v + lam * self.AtA(v, csm, mask)

        r = b - M(x)
        p = r
        rsold = jnp.real(jnp.sum(jnp.conj(r) * r))
        for _ in range(self.cg_iters):
            Ap = M(p)
            a = rsold / (jnp.real(jnp.sum(jnp.conj(p) * Ap)) + 1e-12)
            x = x + a * p
            r = r - a * Ap
            rsnew = jnp.real(jnp.sum(jnp.conj(r) * r))
            p = r + (rsnew / (rsold + 1e-12)) * p
            rsold = rsnew
        return _c2r(x)


# -------------------------------- modlBlock -----------------------------------

class ModlBlock:
    """JAX/Pallas equivalent of the PyTorch modlBlock."""

    def __init__(self, A, lam, input_channels, features, output_channels,
                 number_of_layers, spectral_norm=False, *, key):
        # TODO(synk): spectral_norm reparameterization of conv weights not applied.
        self.A = A
        self.lam = jnp.asarray(lam, jnp.float32)     # learned parameter
        self.alpha = jnp.asarray(1.0, jnp.float32)   # present in reference, unused in forward
        self.dw_params = init_dwblock_params(
            key, input_channels, features, output_channels, number_of_layers)

    def rhs(self, x, Atb):
        # z = x - dw(x);  rhs = z + lam*Atb  (single fused Pallas kernel)
        return modl_rhs_fused(x, Atb, self.lam, self.dw_params)

    def __call__(self, x, Atb, csm, mask):
        rhs = self.rhs(x, Atb)
        x = self.A.inv(x, rhs, self.lam, csm, mask)
        return x


# ----------------------------------- main --------------------------------------

if __name__ == "__main__":
    key = jax.random.PRNGKey(0)
    N, COILS, H, W = 2, 4, 16, 16
    in_ch, feat, out_ch, nlayers = 2, 16, 2, 3

    key, kgr, kgi, kcr, kci, kmask, kparams = jax.random.split(key, 7)

    # Ground-truth complex image, coil sensitivities (sum-of-squares = 1), mask.
    gt = (jax.random.normal(kgr, (N, H, W)) +
          1j * jax.random.normal(kgi, (N, H, W))).astype(jnp.complex64)
    csm = (jax.random.normal(kcr, (N, COILS, H, W)) +
           1j * jax.random.normal(kci, (N, COILS, H, W))).astype(jnp.complex64)
    csm = csm / jnp.sqrt(jnp.sum(jnp.abs(csm) ** 2, axis=1, keepdims=True) + 1e-8)
    mask = (jax.random.uniform(kmask, (N, H, W)) < 0.4).astype(jnp.float32)

    A = SenseMRIOperator(cg_iters=6)

    # Measured k-space and zero-filled adjoint recon Atb = A^H b.
    ksp = jnp.fft.fft2(csm * gt[:, None, :, :], norm="ortho") * mask[:, None, :, :]
    Atb = _c2r(A.At(ksp, csm, mask))          # (N, 2, H, W) f32
    x0 = Atb                                  # standard initialization

    block = ModlBlock(A, lam=0.05, input_channels=in_ch, features=feat,
                      output_channels=out_ch, number_of_layers=nlayers,
                      key=kparams)

    # Validate the fused Pallas dw+rhs kernel against a plain-JAX reference
    # (all-f32 kernel -> tight tolerance).
    rhs_pallas = jax.jit(block.rhs)(x0, Atb)
    rhs_ref = x0 - dw_reference(block.dw_params, x0) + block.lam * Atb
    err = float(jnp.max(jnp.abs(rhs_pallas - rhs_ref)))
    assert err < 1e-3, f"fused dw+rhs kernel mismatch (max abs err {err})"

    # Full MoDL block forward.
    fwd = jax.jit(lambda x, atb, c, m: block(x, atb, c, m))
    out = fwd(x0, Atb, csm, mask)
    jax.block_until_ready(out)

    assert out.shape == (N, 2, H, W) and out.dtype == jnp.float32
    print("KERNEL_OK")
</pallas_src>

<mosaic_0001>
module attributes {stable_mosaic.version = 11 : i64} {
  func.func @_modl_rhs_kernel(%arg0: i32, %arg1: memref<1xf32, #tpu.memory_space<smem>>, %arg2: memref<2x768xf32, #tpu.memory_space<vmem>>, %arg3: memref<2x768xf32, #tpu.memory_space<vmem>>, %arg4: memref<1x768xf32, #tpu.memory_space<vmem>>, %arg5: memref<16x18xf32, #tpu.memory_space<vmem>>, %arg6: memref<16x1xf32, #tpu.memory_space<vmem>>, %arg7: memref<16x144xf32, #tpu.memory_space<vmem>>, %arg8: memref<16x1xf32, #tpu.memory_space<vmem>>, %arg9: memref<2x144xf32, #tpu.memory_space<vmem>>, %arg10: memref<2x1xf32, #tpu.memory_space<vmem>>, %arg11: memref<2x768xf32, #tpu.memory_space<vmem>>) attributes {dimension_semantics = [#tpu.dimension_semantics<parallel>], iteration_bounds = array<i64: 1>, scalar_prefetch = 0 : i64, scratch_operands = 0 : i64, tpu.core_type = #tpu.core_type<tc>, window_params = [{transform_indices = @transform_0, window_bounds = array<i64: 1>}, {transform_indices = @transform_1, window_bounds = array<i64: 2, 768>}, {transform_indices = @transform_2, window_bounds = array<i64: 2, 768>}, {pipeline_mode = #tpu.pipeline_mode<synchronous>, transform_indices = @transform_3, window_bounds = array<i64: 1, 768>}, {pipeline_mode = #tpu.pipeline_mode<synchronous>, transform_indices = @transform_4, window_bounds = array<i64: 16, 18>}, {pipeline_mode = #tpu.pipeline_mode<synchronous>, transform_indices = @transform_5, window_bounds = array<i64: 16, 1>}, {pipeline_mode = #tpu.pipeline_mode<synchronous>, transform_indices = @transform_6, window_bounds = array<i64: 16, 144>}, {pipeline_mode = #tpu.pipeline_mode<synchronous>, transform_indices = @transform_7, window_bounds = array<i64: 16, 1>}, {pipeline_mode = #tpu.pipeline_mode<synchronous>, transform_indices = @transform_8, window_bounds = array<i64: 2, 144>}, {pipeline_mode = #tpu.pipeline_mode<synchronous>, transform_indices = @transform_9, window_bounds = array<i64: 2, 1>}, {transform_indices = @transform_10, window_bounds = array<i64: 2, 768>}]} {
    %c0 = arith.constant 0 : index
    %0 = memref.load %arg1[%c0] : memref<1xf32, #tpu.memory_space<smem>>
    %c0_0 = arith.constant 0 : index
    %c0_1 = arith.constant 0 : index
    %1 = vector.load %arg2[%c0_0, %c0_1] : memref<2x768xf32, #tpu.memory_space<vmem>>, vector<2x768xf32>
    %c0_2 = arith.constant 0 : index
    %c0_3 = arith.constant 0 : index
    %2 = vector.load %arg3[%c0_2, %c0_3] : memref<2x768xf32, #tpu.memory_space<vmem>>, vector<2x768xf32>
    %c0_4 = arith.constant 0 : index
    %c0_5 = arith.constant 0 : index
    %3 = vector.load %arg4[%c0_4, %c0_5] : memref<1x768xf32, #tpu.memory_space<vmem>>, vector<1x768xf32>
    %4 = vector.shape_cast %3 : vector<1x768xf32> to vector<1x768xf32>
    %5 = vector.broadcast %4 : vector<1x768xf32> to vector<16x768xf32>
    %c0_6 = arith.constant 0 : index
    %c0_7 = arith.constant 0 : index
    %6 = vector.load %arg5[%c0_6, %c0_7] : memref<16x18xf32, #tpu.memory_space<vmem>>, vector<16x18xf32>
    %c0_8 = arith.constant 0 : index
    %c0_9 = arith.constant 0 : index
    %7 = vector.load %arg6[%c0_8, %c0_9] : memref<16x1xf32, #tpu.memory_space<vmem>>, vector<16x1xf32>
    %c19_i32 = arith.constant 19 : i32
    %8 = tpu.dynamic_rotate %1 by %c19_i32 dim 1 : vector<2x768xf32>, i32 -> vector<2x768xf32>
    %c18_i32 = arith.constant 18 : i32
    %9 = tpu.dynamic_rotate %1 by %c18_i32 dim 1 : vector<2x768xf32>, i32 -> vector<2x768xf32>
    %c17_i32 = arith.constant 17 : i32
    %10 = tpu.dynamic_rotate %1 by %c17_i32 dim 1 : vector<2x768xf32>, i32 -> vector<2x768xf32>
    %c1_i32 = arith.constant 1 : i32
    %11 = tpu.dynamic_rotate %1 by %c1_i32 dim 1 : vector<2x768xf32>, i32 -> vector<2x768xf32>
    %c767_i32 = arith.constant 767 : i32
    %12 = tpu.dynamic_rotate %1 by %c767_i32 dim 1 : vector<2x768xf32>, i32 -> vector<2x768xf32>
    %c751_i32 = arith.constant 751 : i32
    %13 = tpu.dynamic_rotate %1 by %c751_i32 dim 1 : vector<2x768xf32>, i32 -> vector<2x768xf32>
    %c750_i32 = arith.constant 750 : i32
    %14 = tpu.dynamic_rotate %1 by %c750_i32 dim 1 : vector<2x768xf32>, i32 -> vector<2x768xf32>
    %c749_i32 = arith.constant 749 : i32
    %15 = tpu.dynamic_rotate %1 by %c749_i32 dim 1 : vector<2x768xf32>, i32 -> vector<2x768xf32>
    %16 = tpu.concatenate %8, %9, %10, %11, %1, %12, %13, %14, %15 in 0 : vector<2x768xf32>, vector<2x768xf32>, vector<2x768xf32>, vector<2x768xf32>, vector<2x768xf32>, vector<2x768xf32>, vector<2x768xf32>, vector<2x768xf32>, vector<2x768xf32> -> vector<18x768xf32>
    %cst = arith.constant dense<0.000000e+00> : vector<16x768xf32>
    %17 = tpu.matmul %6, %16, %cst {dimension_numbers = #tpu.dot_dimension_numbers<[1], [0], [0], [1], [0, 0, 1, 1], [], []>} : vector<16x18xf32>, vector<18x768xf32>, vector<16x768xf32> -> vector<16x768xf32>
    %18 = vector.broadcast %7 : vector<16x1xf32> to vector<16x768xf32>
    %19 = arith.addf %17, %18 : vector<16x768xf32>
    %cst_10 = arith.constant 0.000000e+00 : f32
    %20 = vector.broadcast %cst_10 : f32 to vector<16x768xf32>
    %21 = arith.maximumf %19, %20 : vector<16x768xf32>
    %22 = arith.mulf %21, %5 : vector<16x768xf32>
    %c0_11 = arith.constant 0 : index
    %c0_12 = arith.constant 0 : index
    %23 = vector.load %arg7[%c0_11, %c0_12] : memref<16x144xf32, #tpu.memory_space<vmem>>, vector<16x144xf32>
    %c0_13 = arith.constant 0 : index
    %c0_14 = arith.constant 0 : index
    %24 = vector.load %arg8[%c0_13, %c0_14] : memref<16x1xf32, #tpu.memory_space<vmem>>, vector<16x1xf32>
    %c19_i32_15 = arith.constant 19 : i32
    %25 = tpu.dynamic_rotate %22 by %c19_i32_15 dim 1 : vector<16x768xf32>, i32 -> vector<16x768xf32>
    %c18_i32_16 = arith.constant 18 : i32
    %26 = tpu.dynamic_rotate %22 by %c18_i32_16 dim 1 : vector<16x768xf32>, i32 -> vector<16x768xf32>
    %c17_i32_17 = arith.constant 17 : i32
    %27 = tpu.dynamic_rotate %22 by %c17_i32_17 dim 1 : vector<16x768xf32>, i32 -> vector<16x768xf32>
    %c1_i32_18 = arith.constant 1 : i32
    %28 = tpu.dynamic_rotate %22 by %c1_i32_18 dim 1 : vector<16x768xf32>, i32 -> vector<16x768xf32>
    %c767_i32_19 = arith.constant 767 : i32
    %29 = tpu.dynamic_rotate %22 by %c767_i32_19 dim 1 : vector<16x768xf32>, i32 -> vector<16x768xf32>
    %c751_i32_20 = arith.constant 751 : i32
    %30 = tpu.dynamic_rotate %22 by %c751_i32_20 dim 1 : vector<16x768xf32>, i32 -> vector<16x768xf32>
    %c750_i32_21 = arith.constant 750 : i32
    %31 = tpu.dynamic_rotate %22 by %c750_i32_21 dim 1 : vector<16x768xf32>, i32 -> vector<16x768xf32>
    %c749_i32_22 = arith.constant 749 : i32
    %32 = tpu.dynamic_rotate %22 by %c749_i32_22 dim 1 : vector<16x768xf32>, i32 -> vector<16x768xf32>
    %33 = tpu.concatenate %25, %26, %27, %28, %22, %29, %30, %31, %32 in 0 : vector<16x768xf32>, vector<16x768xf32>, vector<16x768xf32>, vector<16x768xf32>, vector<16x768xf32>, vector<16x768xf32>, vector<16x768xf32>, vector<16x768xf32>, vector<16x768xf32> -> vector<144x768xf32>
    %cst_23 = arith.constant dense<0.000000e+00> : vector<16x768xf32>
    %34 = tpu.matmul %23, %33, %cst_23 {dimension_numbers = #tpu.dot_dimension_numbers<[1], [0], [0], [1], [0, 0, 1, 1], [], []>} : vector<16x144xf32>, vector<144x768xf32>, vector<16x768xf32> -> vector<16x768xf32>
    %35 = vector.broadcast %24 : vector<16x1xf32> to vector<16x768xf32>
    %36 = arith.addf %34, %35 : vector<16x768xf32>
    %cst_24 = arith.constant 0.000000e+00 : f32
    %37 = vector.broadcast %cst_24 : f32 to vector<16x768xf32>
    %38 = arith.maximumf %36, %37 : vector<16x768xf32>
    %39 = arith.mulf %38, %5 : vector<16x768xf32>
    %c0_25 = arith.constant 0 : index
    %c0_26 = arith.constant 0 : index
    %40 = vector.load %arg9[%c0_25, %c0_26] : memref<2x144xf32, #tpu.memory_space<vmem>>, vector<2x144xf32>
    %c0_27 = arith.constant 0 : index
    %c0_28 = arith.constant 0 : index
    %41 = vector.load %arg10[%c0_27, %c0_28] : memref<2x1xf32, #tpu.memory_space<vmem>>, vector<2x1xf32>
    %c19_i32_29 = arith.constant 19 : i32
    %42 = tpu.dynamic_rotate %39 by %c19_i32_29 dim 1 : vector<16x768xf32>, i32 -> vector<16x768xf32>
    %c18_i32_30 = arith.constant 18 : i32
    %43 = tpu.dynamic_rotate %39 by %c18_i32_30 dim 1 : vector<16x768xf32>, i32 -> vector<16x768xf32>
    %c17_i32_31 = arith.constant 17 : i32
    %44 = tpu.dynamic_rotate %39 by %c17_i32_31 dim 1 : vector<16x768xf32>, i32 -> vector<16x768xf32>
    %c1_i32_32 = arith.constant 1 : i32
    %45 = tpu.dynamic_rotate %39 by %c1_i32_32 dim 1 : vector<16x768xf32>, i32 -> vector<16x768xf32>
    %c767_i32_33 = arith.constant 767 : i32
    %46 = tpu.dynamic_rotate %39 by %c767_i32_33 dim 1 : vector<16x768xf32>, i32 -> vector<16x768xf32>
    %c751_i32_34 = arith.constant 751 : i32
    %47 = tpu.dynamic_rotate %39 by %c751_i32_34 dim 1 : vector<16x768xf32>, i32 -> vector<16x768xf32>
    %c750_i32_35 = arith.constant 750 : i32
    %48 = tpu.dynamic_rotate %39 by %c750_i32_35 dim 1 : vector<16x768xf32>, i32 -> vector<16x768xf32>
    %c749_i32_36 = arith.constant 749 : i32
    %49 = tpu.dynamic_rotate %39 by %c749_i32_36 dim 1 : vector<16x768xf32>, i32 -> vector<16x768xf32>
    %50 = tpu.concatenate %42, %43, %44, %45, %39, %46, %47, %48, %49 in 0 : vector<16x768xf32>, vector<16x768xf32>, vector<16x768xf32>, vector<16x768xf32>, vector<16x768xf32>, vector<16x768xf32>, vector<16x768xf32>, vector<16x768xf32>, vector<16x768xf32> -> vector<144x768xf32>
    %cst_37 = arith.constant dense<0.000000e+00> : vector<2x768xf32>
    %51 = tpu.matmul %40, %50, %cst_37 {dimension_numbers = #tpu.dot_dimension_numbers<[1], [0], [0], [1], [0, 0, 1, 1], [], []>} : vector<2x144xf32>, vector<144x768xf32>, vector<2x768xf32> -> vector<2x768xf32>
    %52 = vector.broadcast %41 : vector<2x1xf32> to vector<2x768xf32>
    %53 = arith.addf %51, %52 : vector<2x768xf32>
    %54 = arith.subf %1, %53 : vector<2x768xf32>
    %55 = vector.broadcast %0 : f32 to vector<2x768xf32>
    %56 = arith.mulf %55, %2 : vector<2x768xf32>
    %57 = arith.addf %54, %56 : vector<2x768xf32>
    %c0_38 = arith.constant 0 : index
    %c0_39 = arith.constant 0 : index
    %58 = vector.load %arg11[%c0_38, %c0_39] : memref<2x768xf32, #tpu.memory_space<vmem>>, vector<2x768xf32>
    tpu.vector_store %arg11[%c0_38, %c0_39], %57 {strides = array<i32>} : memref<2x768xf32, #tpu.memory_space<vmem>>, vector<2x768xf32>,
    return
  }
  func.func @transform_0(%arg0: i32) -> i32 {
    %c0_i32 = arith.constant 0 : i32
    %c0_i32_0 = arith.constant 0 : i32
    return %c0_i32 : i32
  }
  func.func @transform_1(%arg0: i32) -> (i32, i32) {
    %c0_i32 = arith.constant 0 : i32
    %c0_i32_0 = arith.constant 0 : i32
    return %c0_i32, %arg0 : i32, i32
  }
  func.func @transform_2(%arg0: i32) -> (i32, i32) {
    %c0_i32 = arith.constant 0 : i32
    %c0_i32_0 = arith.constant 0 : i32
    return %c0_i32, %arg0 : i32, i32
  }
  func.func @transform_3(%arg0: i32) -> (i32, i32) {
    %c0_i32 = arith.constant 0 : i32
    %c0_i32_0 = arith.constant 0 : i32
    %c0_i32_1 = arith.constant 0 : i32
    return %c0_i32, %c0_i32_0 : i32, i32
  }
  func.func @transform_4(%arg0: i32) -> (i32, i32) {
    %c0_i32 = arith.constant 0 : i32
    %c0_i32_0 = arith.constant 0 : i32
    %c0_i32_1 = arith.constant 0 : i32
    return %c0_i32, %c0_i32_0 : i32, i32
  }
  func.func @transform_5(%arg0: i32) -> (i32, i32) {
    %c0_i32 = arith.constant 0 : i32
    %c0_i32_0 = arith.constant 0 : i32
    %c0_i32_1 = arith.constant 0 : i32
    return %c0_i32, %c0_i32_0 : i32, i32
  }
  func.func @transform_6(%arg0: i32) -> (i32, i32) {
    %c0_i32 = arith.constant 0 : i32
    %c0_i32_0 = arith.constant 0 : i32
    %c0_i32_1 = arith.constant 0 : i32
    return %c0_i32, %c0_i32_0 : i32, i32
  }
  func.func @transform_7(%arg0: i32) -> (i32, i32) {
    %c0_i32 = arith.constant 0 : i32
    %c0_i32_0 = arith.constant 0 : i32
    %c0_i32_1 = arith.constant 0 : i32
    return %c0_i32, %c0_i32_0 : i32, i32
  }
  func.func @transform_8(%arg0: i32) -> (i32, i32) {
    %c0_i32 = arith.constant 0 : i32
    %c0_i32_0 = arith.constant 0 : i32
    %c0_i32_1 = arith.constant 0 : i32
    return %c0_i32, %c0_i32_0 : i32, i32
  }
  func.func @transform_9(%arg0: i32) -> (i32, i32) {
    %c0_i32 = arith.constant 0 : i32
    %c0_i32_0 = arith.constant 0 : i32
    %c0_i32_1 = arith.constant 0 : i32
    return %c0_i32, %c0_i32_0 : i32, i32
  }
  func.func @transform_10(%arg0: i32) -> (i32, i32) {
    %c0_i32 = arith.constant 0 : i32
    %c0_i32_0 = arith.constant 0 : i32
    return %c0_i32, %arg0 : i32, i32
  }
}

</mosaic_0001>

<bundles_post_ra>
// kernel: rhs.2
= control target key start
LH: loop header
LB: loop body
LE: loop exit
PB: predicated region body
PF: predicated region fallthrough
CT: control target
= control target key end

     0   :  { %s2513_s17 = smov 19   ;;  %s2515_s18 = smov 17   ;;  %vm458_vm2 = vcmask 1041408   ;;  %vm465_vm7 = vcmask 1043456   ;;  %vm472_vm9 = vcmask 1045504   ;;  %vm507_vm11 = vcmask 146432   ;;  %s4634_s1 = inlined_call_operand.vmem [shape: f32[2,768], index: 1, kind: input, shape index: {}]   ;;  %s4635_s5 = inlined_call_operand.vmem [shape: f32[16,1], index: 5, kind: input, shape index: {}]   ;;  %s4636_s4 = inlined_call_operand.vmem [shape: f32[16,18], index: 4, kind: input, shape index: {}]   ;;  %s4637_s3 = inlined_call_operand.vmem [shape: f32[1,768], index: 3, kind: input, shape index: {}]   ;;  %s4638_s7 = inlined_call_operand.vmem [shape: f32[16,1], index: 7, kind: input, shape index: {}]   ;;  %s4639_s6 = inlined_call_operand.vmem [shape: f32[16,144], index: 6, kind: input, shape index: {}]   ;;  %s4640_s8 = inlined_call_operand.vmem [shape: f32[2,144], index: 8, kind: input, shape index: {}]   ;;  %s4641_s9 = inlined_call_operand.vmem [shape: f32[2,1], index: 9, kind: input, shape index: {}]   ;;  %s4642_s0 = inlined_call_operand.<no memory space> [shape: f32[1], index: 0, kind: input, shape index: {}]   ;;  %s4643_s2 = inlined_call_operand.vmem [shape: f32[2,768], index: 2, kind: input, shape index: {}]   ;;  %s4644_s10 = inlined_call_operand.vmem [shape: f32[2,768], index: 10, kind: output, shape index: {}]  }
   0x1   :  { %v2580_v0 = vld [vmem:[%s4634_s1 + $0x8] sm:$0xf]  ;;  %v2585_v1 = vld [vmem:[%s4634_s1] sm:$0xff]  ;;  %s2514_s1 = smov 18   ;;  %s2516_s19 = smov 1   ;;  %vm998_vm12 = vcmask 130048  }
   0x2   :  { %4733 = vst [vmem:[#allocation3_spill] sm:$0xff] %v2580_v0  ;;  %s2517_s20 = smov 127   ;;  %s2518_s21 = smov 111   ;;  %vm1858_vm13 = vcmask 1045508  }
   0x3   :  { %4734 = vst [vmem:[#allocation4_spill] sm:$0xff] %v2585_v1  ;;  %s2519_s22 = smov 110   ;;  %s2520_s23 = smov 109  }
   0x4   :  { %63 = vst [vmem:[#allocation1 + $0x20] ss:$4 sm:$0xff] %v2580_v0 }
   0x5   :  { %61 = vst [vmem:[#allocation1] ss:$4 sm:$0xff] %v2585_v1 }
   0xb   :  { %v68_v2 = vld.sshfl [vmem:[#allocation1 + $0x20] sm:$0xff pattern:$0x73625140]  ;;  %v69_v3 = vld.sshfl [vmem:[#allocation1 + $0x28] sm:$0xff pattern:$0x73625140] }
   0xc   :  { %v1935_v4 = vpack.i.bf16 %v69_v3, %v68_v2  ;;  %99 = vst [vmem:[#allocation1 + $0x20] ss:$4 sm:$0xff] %v2580_v0  ;;  %v64_v5 = vld.sshfl [vmem:[#allocation1] sm:$0xff pattern:$0x73625140] }
   0xd   :  { %v65_v6 = vld.sshfl [vmem:[#allocation1 + $0x8] sm:$0xff pattern:$0x73625140]  ;;  %v66_v7 = vld.sshfl [vmem:[#allocation1 + $0x10] sm:$0xff pattern:$0x73625140] }
   0xe   :  { %1936 = vrot.lane.b32.xlu1 %v1935_v4, %s2513_s17  ;;  %v1925_v8 = vpack.i.bf16 %v65_v6, %v64_v5  ;;  %v67_v9 = vld.sshfl [vmem:[#allocation1 + $0x18] sm:$0xff pattern:$0x73625140] }
   0xf   :  { %97 = vst [vmem:[#allocation1] ss:$4 sm:$0xff] %v2585_v1  ;;  %v1930_v12 = vpack.i.bf16 %v67_v9, %v66_v7 }
  0x10   :  { %1926 = vrot.lane.b32.xlu0 %v1925_v8, %s2513_s17 }
  0x13   :  { %v104_v10 = vld.sshfl [vmem:[#allocation1 + $0x20] sm:$0xff pattern:$0x73625140]  ;;  %v105_v11 = vld.sshfl [vmem:[#allocation1 + $0x28] sm:$0xff pattern:$0x73625140] }
  0x14   :  { %133 = vst [vmem:[#allocation1 + $0x20] ss:$4 sm:$0xff] %v2580_v0  ;;  %v1950_v21 = vpack.i.bf16 %v105_v11, %v104_v10  ;;  %v88_v10 = vlaneseq }
  0x16   :  { %v100_v13 = vld.sshfl [vmem:[#allocation1] sm:$0xff pattern:$0x73625140]  ;;  %v101_v14 = vld.sshfl [vmem:[#allocation1 + $0x8] sm:$0xff pattern:$0x73625140] }
  0x17   :  { %v1940_v15 = vpack.i.bf16 %v101_v14, %v100_v13  ;;  %v102_v16 = vld.sshfl [vmem:[#allocation1 + $0x10] sm:$0xff pattern:$0x73625140]  ;;  %v103_v17 = vld.sshfl [vmem:[#allocation1 + $0x18] sm:$0xff pattern:$0x73625140] }
  0x18   :  { %1931 = vrot.lane.b32.xlu0 %v1930_v12, %s2513_s17  ;;  %v1945_v18 = vpack.i.bf16 %v103_v17, %v102_v16  ;;  %131 = vst [vmem:[#allocation1] ss:$4 sm:$0xff] %v2585_v1  ;;  %v2640_v11 = vand.u32 127, %v88_v10 }
  0x19   :  { %1941 = vrot.lane.b32.xlu1 %v1940_v15, %s2514_s1 }
  0x1a   :  { %1946 = vrot.lane.b32.xlu2 %v1945_v18, %s2514_s1  ;;  %vm124_vm0 = vcmp.lt.s32.totalorder %v2640_v11, 18  ;;  %vm90_vm1 = vcmp.lt.s32.totalorder %v2640_v11, 19  ;;  %vm226_vm3 = vcmp.lt.s32.totalorder %v2640_v11, 127  ;;  %vm158_vm4 = vcmp.lt.s32.totalorder %v2640_v11, 17 }
  0x1b   :  { %v138_v19 = vld.sshfl [vmem:[#allocation1 + $0x20] sm:$0xff pattern:$0x73625140]  ;;  %v139_v20 = vld.sshfl [vmem:[#allocation1 + $0x28] sm:$0xff pattern:$0x73625140] }
  0x1c   :  { %167 = vst [vmem:[#allocation1 + $0x20] ss:$4 sm:$0xff] %v2580_v0  ;;  %v1965_v30 = vpack.i.bf16 %v139_v20, %v138_v19  ;;  %vm260_vm5 = vcmp.lt.s32.totalorder %v2640_v11, 111  ;;  %vm192_vm6 = vcmp.lt.s32.totalorder %v2640_v11, 1  ;;  %vm294_vm8 = vcmp.lt.s32.totalorder %v2640_v11, 110 }
  0x1d   :  { %vm328_vm10 = vcmp.lt.s32.totalorder %v2640_v11, 109 }
  0x1f   :  { %v136_v22 = vld.sshfl [vmem:[#allocation1 + $0x10] sm:$0xff pattern:$0x73625140]  ;;  %v137_v23 = vld.sshfl [vmem:[#allocation1 + $0x18] sm:$0xff pattern:$0x73625140] }
  0x20   :  { %v1960_v24 = vpack.i.bf16 %v137_v23, %v136_v22  ;;  %v134_v25 = vld.sshfl [vmem:[#allocation1] sm:$0xff pattern:$0x73625140]  ;;  %v135_v26 = vld.sshfl [vmem:[#allocation1 + $0x8] sm:$0xff pattern:$0x73625140] }
  0x21   :  { %v1955_v27 = vpack.i.bf16 %v135_v26, %v134_v25  ;;  %165 = vst [vmem:[#allocation1] ss:$4 sm:$0xff] %v2585_v1 }
  0x22   :  { %1961 = vrot.lane.b32.xlu1 %v1960_v24, %s2515_s18  ;;  %1951 = vrot.lane.b32.xlu2 %v1950_v21, %s2514_s1 }
  0x23   :  { %1956 = vrot.lane.b32.xlu0 %v1955_v27, %s2515_s18  ;;  %v2603_v28 = vld.sshfl [vmem:[#allocation1 + $0x20] sm:$0xff pattern:$0x73625140]  ;;  %v173_v29 = vld.sshfl [vmem:[#allocation1 + $0x28] sm:$0xff pattern:$0x73625140] }
  0x24   :  { %201 = vst [vmem:[#allocation1 + $0x20] ss:$4 sm:$0xff] %v2580_v0 }
  0x28   :  { %v168_v31 = vld.sshfl [vmem:[#allocation1] sm:$0xff pattern:$0x73625140]  ;;  %v169_v32 = vld.sshfl [vmem:[#allocation1 + $0x8] sm:$0xff pattern:$0x73625140] }
  0x29   :  { %v2606_v33 = vld.sshfl [vmem:[#allocation1 + $0x18] sm:$0xff pattern:$0x73625140]  ;;  %v1970_v34 = vpack.i.bf16 %v169_v32, %v168_v31  ;;  %v170_v35 = vld.sshfl [vmem:[#allocation1 + $0x10] sm:$0xff pattern:$0x73625140] }
  0x2a   :  { %1966 = vrot.lane.b32.xlu2 %v1965_v30, %s2515_s18  ;;  %199 = vst [vmem:[#allocation1] ss:$4 sm:$0xff] %v2585_v1  ;;  %v1975_v38 = vpack.i.bf16 %v170_v35, %v173_v29  ;;  %v2025_v8 = vpack.i.bf16 %v2603_v28, %v2606_v33 }
  0x2b   :  { %1971 = vrot.lane.b32.xlu0 %v1970_v34, %s2516_s19  ;;  %v206_v36 = vld.sshfl [vmem:[#allocation1 + $0x20] sm:$0xff pattern:$0x73625140]  ;;  %v207_v37 = vld.sshfl [vmem:[#allocation1 + $0x28] sm:$0xff pattern:$0x73625140] }
  0x2c   :  { %235 = vst [vmem:[#allocation1 + $0x20] ss:$4 sm:$0xff] %v2580_v0  ;;  %v2010_v5 = vpack.i.bf16 %v207_v37, %v206_v36 }
  0x31   :  { %v202_v39 = vld.sshfl [vmem:[#allocation1] sm:$0xff pattern:$0x73625140]  ;;  %v203_v40 = vld.sshfl [vmem:[#allocation1 + $0x8] sm:$0xff pattern:$0x73625140] }
  0x32   :  { %v1980_v41 = vpack.i.bf16 %v203_v40, %v202_v39  ;;  %v204_v42 = vld.sshfl [vmem:[#allocation1 + $0x10] sm:$0xff pattern:$0x73625140]  ;;  %v205_v43 = vld.sshfl [vmem:[#allocation1 + $0x18] sm:$0xff pattern:$0x73625140] }
  0x33   :  { %1976 = vrot.lane.b32.xlu0 %v1975_v38, %s2516_s19  ;;  %233 = vst [vmem:[#allocation1] ss:$4 sm:$0xff] %v2585_v1  ;;  %v240_v44 = vld.sshfl [vmem:[#allocation1 + $0x20] sm:$0xff pattern:$0x73625140]  ;;  %v1985_v46 = vpack.i.bf16 %v205_v43, %v204_v42 }
  0x34   :  { %1981 = vrot.lane.b32.xlu1 %v1980_v41, %s2517_s20  ;;  %v241_v45 = vld.sshfl [vmem:[#allocation1 + $0x28] sm:$0xff pattern:$0x73625140] }
  0x35   :  { %269 = vst [vmem:[#allocation1 + $0x20] ss:$4 sm:$0xff] %v2580_v0  ;;  %v2015_v6 = vpack.i.bf16 %v241_v45, %v240_v44 }
  0x3a   :  { %v236_v47 = vld.sshfl [vmem:[#allocation1] sm:$0xff pattern:$0x73625140]  ;;  %v237_v48 = vld.sshfl [vmem:[#allocation1 + $0x8] sm:$0xff pattern:$0x73625140] }
  0x3b   :  { %v1990_v49 = vpack.i.bf16 %v237_v48, %v236_v47  ;;  %v238_v50 = vld.sshfl [vmem:[#allocation1 + $0x10] sm:$0xff pattern:$0x73625140]  ;;  %v239_v51 = vld.sshfl [vmem:[#allocation1 + $0x18] sm:$0xff pattern:$0x73625140] }
  0x3c   :  { %1986 = vrot.lane.b32.xlu1 %v1985_v46, %s2517_s20  ;;  %267 = vst [vmem:[#allocation1] ss:$4 sm:$0xff] %v2585_v1  ;;  %v274_v52 = vld.sshfl [vmem:[#allocation1 + $0x20] sm:$0xff pattern:$0x73625140]  ;;  %v1995_v54 = vpack.i.bf16 %v239_v51, %v238_v50 }
  0x3d   :  { %1991 = vrot.lane.b32.xlu2 %v1990_v49, %s2518_s21  ;;  %v275_v53 = vld.sshfl [vmem:[#allocation1 + $0x28] sm:$0xff pattern:$0x73625140] }
  0x3e   :  { %303 = vst [vmem:[#allocation1 + $0x20] ss:$4 sm:$0xff] %v2580_v0  ;;  %v2020_v7 = vpack.i.bf16 %v275_v53, %v274_v52 }
  0x43   :  { %v272_v55 = vld.sshfl [vmem:[#allocation1 + $0x10] sm:$0xff pattern:$0x73625140]  ;;  %v273_v56 = vld.sshfl [vmem:[#allocation1 + $0x18] sm:$0xff pattern:$0x73625140] }
  0x44   :  { %v270_v57 = vld.sshfl [vmem:[#allocation1] sm:$0xff pattern:$0x73625140]  ;;  %v271_v58 = vld.sshfl [vmem:[#allocation1 + $0x8] sm:$0xff pattern:$0x73625140]  ;;  %v2005_v62 = vpack.i.bf16 %v273_v56, %v272_v55 }
  0x45   :  { %1996 = vrot.lane.b32.xlu2 %v1995_v54, %s2518_s21  ;;  %v2000_v59 = vpack.i.bf16 %v271_v58, %v270_v57  ;;  %301 = vst [vmem:[#allocation1] ss:$4 sm:$0xff] %v2585_v1  ;;  %v308_v60 = vld.sshfl [vmem:[#allocation1 + $0x20] sm:$0xff pattern:$0x73625140] }
  0x46   :  { %v309_v61 = vld.sshfl [vmem:[#allocation1 + $0x28] sm:$0xff pattern:$0x73625140] }
  0x47   :  { %2001 = vrot.lane.b32.xlu0 %v2000_v59, %s2519_s22  ;;  %391 = vst [vmem:[#allocation1 + $0x20] ss:$4 sm:$0xff] %v2580_v0 }
  0x4c   :  { %v304_v63 = vld.sshfl [vmem:[#allocation1] sm:$0xff pattern:$0x73625140]  ;;  %v305_v2 = vld.sshfl [vmem:[#allocation1 + $0x8] sm:$0xff pattern:$0x73625140] }
  0x4d   :  { %316 = vrot.lane.b32.xlu1 %v304_v63, %s2520_s23  ;;  %318 = vrot.lane.b32.xlu2 %v305_v2, %s2520_s23  ;;  %v306_v3 = vld.sshfl [vmem:[#allocation1 + $0x10] sm:$0xff pattern:$0x73625140]  ;;  %v307_v4 = vld.sshfl [vmem:[#allocation1 + $0x18] sm:$0xff pattern:$0x73625140] }
  0x4e   :  { %389 = vst [vmem:[#allocation1] ss:$4 sm:$0xff] %v2585_v1  ;;  %v2521_v63 = vmov 0   ;;  %v57_v2 = vld [vmem:[%s4635_s5] sm:$0xff] }
  0x4f   :  { %2006 = vrot.lane.b32.xlu0 %v2005_v62, %s2519_s22  ;;  %2031 = vset.pattern.permute.xlu1 %v2521_v63 }
  0x50   :  { %2030 = vset.pattern.permute.xlu0 %v2521_v63  ;;  %2512 = vset.pattern.permute.xlu2 %v2521_v63 }
  0x55   :  { %320 = vrot.lane.b32.xlu1 %v306_v3, %s2520_s23  ;;  %322 = vrot.lane.b32.xlu2 %v307_v4, %s2520_s23  ;;  %v58_v3 = vld [vmem:[%s4635_s5 + $0x8] sm:$0xff] }
  0x57   :  { %2011 = vrot.lane.b32.xlu0 %v2010_v5, %s2517_s20 }
  0x5d   :  { %2016 = vrot.lane.b32.xlu1 %v2015_v6, %s2518_s21  ;;  %2021 = vrot.lane.b32.xlu2 %v2020_v7, %s2519_s22 }
  0x5f   :  { %324 = vrot.lane.b32.xlu0 %v308_v60, %s2520_s23 }
  0x65   :  { %2026 = vrot.lane.b32.xlu1 %v2025_v8, %s2516_s19  ;;  %326 = vrot.lane.b32.xlu2 %v309_v61, %s2520_s23 }
  0x67   :  { %499 = vperm.xlu0 %2030, %v57_v2  }
  0x6d   :  { %504 = vperm.xlu1 %2031, %v58_v3  }
  0x74   :  { %v2638_v9 = vpop.permute.xlu2 %1946 }
  0x75   :  { %v1949_v12 = vunpack.i.h.bf16 %v2638_v9  ;;  %v1948_v45 = vunpack.i.l.bf16 %v2638_v9 }
  0x7c   :  { %v1952_v13 = vpop.permute.xlu2 %1951 }
  0x7d   :  { %v1954_v14 = vunpack.i.h.bf16 %v1952_v13  ;;  %v1953_v15 = vunpack.i.l.bf16 %v1952_v13 }
  0x7f   :  { %v125_v16 = vsel %vm124_vm0, %v1953_v15, %v1954_v14  ;;  %v126_v17 = vsel %vm124_vm0, %v1949_v12, %v1953_v15  ;;  %v392_v15 = vld.sshfl [vmem:[#allocation1] sm:$0xff pattern:$0x73625140] }
  0x80   :  { %v1937_v18 = vpop.permute.xlu1 %1936  ;;  %v346_v19 = vrot.slane %v125_v16, 6  ;;  %v345_v26 = vrot.slane %v126_v17, 6 }
  0x81   :  { %v1939_v20 = vunpack.i.h.bf16 %v1937_v18  ;;  %v1938_v21 = vunpack.i.l.bf16 %v1937_v18 }
  0x82   :  { %v2651_v22 = vpop.permute.xlu0 %1926 }
  0x83   :  { %v91_v23 = vsel %vm90_vm1, %v1938_v21, %v1939_v20  ;;  %v1929_v41 = vunpack.i.h.bf16 %v2651_v22  ;;  %v1928_v42 = vunpack.i.l.bf16 %v2651_v22 }
  0x84   :  { %v2656_v24 = vsel %vm458_vm2, %v91_v23, %v346_v19  ;;  %v2665_v29 = vpop.permute.xlu2 %1966 }
  0x85   :  { %v2701_v50 = vsel %vm90_vm1, %v1928_v42, %v1929_v41  ;;  %v96_v51 = vsel %vm90_vm1, %v1939_v20, %v1928_v42  ;;  %v1969_v56 = vunpack.i.h.bf16 %v2665_v29 }
  0x8a   :  { %v2658_v25 = vpop.permute.xlu0 %1931 }
  0x8b   :  { %v1934_v27 = vunpack.i.h.bf16 %v2658_v25  ;;  %v1942_v32 = vpop.permute.xlu1 %1941  ;;  %v1933_v52 = vunpack.i.l.bf16 %v2658_v25 }
  0x8c   :  { %v1943_v40 = vunpack.i.l.bf16 %v1942_v32  ;;  %v1944_v46 = vunpack.i.h.bf16 %v1942_v32 }
  0x8d   :  { %v92_v28 = vsel %vm90_vm1, %v1934_v27, %v1938_v21  ;;  %v2745_v8 = vsel %vm90_vm1, %v1929_v41, %v1933_v52 }
  0x8e   :  { %v2668_v30 = vsel %vm458_vm2, %v92_v28, %v345_v26  ;;  %v130_v49 = vsel %vm124_vm0, %v1954_v14, %v1943_v40  ;;  %v2719_v57 = vsel %vm124_vm0, %v1944_v46, %v1948_v45  ;;  %v2749_v10 = vsel %vm124_vm0, %v1943_v40, %v1944_v46 }
  0x8f   :  { %v341_v59 = vrot.slane %v130_v49, 6  ;;  %v343_v16 = vrot.slane %v2719_v57, 6  ;;  %v2863_v57 = vld [vmem:[%s4636_s4 + $0x8] sm:$0xff] }
  0x91   :  { %v459_v32 = vsel %vm458_vm2, %v96_v51, %v341_v59 }
  0x94   :  { %v2676_v35 = vpop.permute.xlu1 %1961 }
  0x95   :  { %v2672_v33 = vpop.permute.xlu0 %1956  ;;  %v1963_v40 = vunpack.i.l.bf16 %v2676_v35 }
  0x96   :  { %v1958_v58 = vunpack.i.l.bf16 %v2672_v33  ;;  %v1959_v41 = vunpack.i.h.bf16 %v2672_v33 }
  0x97   :  { %v2670_v31 = vpop.permute.xlu2 %1991 }
  0x98   :  { %v1994_v47 = vunpack.i.h.bf16 %v2670_v31  ;;  %v1993_v48 = vunpack.i.l.bf16 %v2670_v31  ;;  %v164_v17 = vsel %vm158_vm4, %v1969_v56, %v1958_v58 }
  0x99   :  { %v359_v42 = vrot.slane %v164_v17, 4 }
  0x9a   :  { %v265_v60 = vsel %vm260_vm5, %v1993_v48, %v1994_v47 }
  0x9b   :  { %v428_v20 = vrot.slane %v265_v60, 4 }
  0x9d   :  { %v2678_v36 = vpop.permute.xlu0 %1971 }
  0x9e   :  { %v1973_v13 = vunpack.i.l.bf16 %v2678_v36 }
  0x9f   :  { %v2674_v34 = vpop.permute.xlu2 %1996 }
  0xa0   :  { %v1999_v18 = vunpack.i.h.bf16 %v2674_v34  ;;  %v1998_v21 = vunpack.i.l.bf16 %v2674_v34 }
  0xa2   :  { %v264_v60 = vsel %vm260_vm5, %v1994_v47, %v1998_v21  ;;  %v342_v47 = vrot.slane %v2749_v10, 6  ;;  %v163_v10 = vsel %vm158_vm4, %v1958_v58, %v1959_v41 }
  0xa5   :  { %v2684_v39 = vpop.permute.xlu0 %1976 }
  0xa6   :  { %v2680_v37 = vpop.permute.xlu1 %1981  ;;  %v1978_v61 = vunpack.i.l.bf16 %v2684_v39  ;;  %v1979_v63 = vunpack.i.h.bf16 %v2684_v39 }
  0xa7   :  { %v2682_v38 = vpop.permute.xlu2 %318  ;;  %v1984_v43 = vunpack.i.h.bf16 %v2680_v37  ;;  %v1983_v44 = vunpack.i.l.bf16 %v2680_v37 }
  0xa8   :  { %v198_v22 = vsel %vm192_vm6, %v1978_v61, %v1973_v13 }
  0xa9   :  { %v231_v53 = vsel %vm226_vm3, %v1983_v44, %v1984_v43  ;;  %v377_v59 = vrot.slane %v198_v22, 2  ;;  %v393_v22 = vld.sshfl [vmem:[#allocation1 + $0x8] sm:$0xff pattern:$0x73625140] }
  0xaa   :  { %v410_v4 = vrot.slane %v231_v53, 6  ;;  %v1974_v53 = vunpack.i.h.bf16 %v2678_v36 }
  0xac   :  { %v479_v28 = vsel %vm458_vm2, %v392_v15, %v410_v4  ;;  %v196_v33 = vsel %vm192_vm6, %v1974_v53, %v1979_v63 }
  0xad   :  { %v485_v4 = vsel %vm465_vm7, %v479_v28, %v428_v20  ;;  %v2815_v20 = vld [vmem:[%s4636_s4] sm:$0xff]  ;;  %v394_v28 = vld.sshfl [vmem:[#allocation1 + $0x10] sm:$0xff pattern:$0x73625140] }
  0xae   :  { %v2710_v54 = vpop.permute.xlu1 %1986 }
  0xaf   :  { %v2712_v55 = vpop.permute.xlu2 %322  ;;  %v1988_v5 = vunpack.i.l.bf16 %v2710_v54  ;;  %v1989_v14 = vunpack.i.h.bf16 %v2710_v54 }
  0xb1   :  { %v230_v23 = vsel %vm226_vm3, %v1984_v43, %v1988_v5  ;;  %v229_v46 = vsel %vm226_vm3, %v1988_v5, %v1989_v14  ;;  %v263_v43 = vsel %vm260_vm5, %v1998_v21, %v1999_v18  ;;  %v162_v21 = vsel %vm158_vm4, %v1959_v41, %v1963_v40 }
  0xb2   :  { %v411_v2 = vrot.slane %v230_v23, 6  ;;  %v412_v5 = vrot.slane %v229_v46, 6  ;;  %v466_v23 = vsel %vm465_vm7, %v459_v32, %v359_v42  ;;  %v429_v42 = vrot.slane %v264_v60, 4 }
  0xb3   :  { %v361_v60 = vrot.slane %v162_v21, 4 }
  0xb7   :  { %v2797_v36 = vpop.permute.xlu2 %2021 }
  0xb9   :  { %v2729_v62 = vpop.permute.xlu0 %2001 }
  0xba   :  { %v2004_v6 = vunpack.i.h.bf16 %v2729_v62  ;;  %v2003_v7 = vunpack.i.l.bf16 %v2729_v62 }
  0xbc   :  { %v299_v19 = vsel %vm294_vm8, %v2003_v7, %v2004_v6 }
  0xbd   :  { %v446_v26 = vrot.slane %v299_v19, 2 }
  0xbf   :  { %v2781_v49 = vpop.permute.xlu1 %316  ;;  %v491_v19 = vsel %vm472_vm9, %v485_v4, %v446_v26  ;;  %v473_v26 = vsel %vm472_vm9, %v466_v23, %v377_v59  ;;  %v197_v4 = vsel %vm192_vm6, %v1973_v13, %v1974_v53  ;;  %v481_v59 = vsel %vm458_vm2, %v394_v28, %v412_v5 }
  0xc0   :  { %v333_v51 = vsel %vm328_vm10, %v2781_v49, %v2682_v38  ;;  %v460_v13 = vsel %vm458_vm2, %v2701_v50, %v342_v47  ;;  %v378_v23 = vrot.slane %v197_v4, 2  ;;  %v2023_v4 = vunpack.i.l.bf16 %v2797_v36 }
  0xc1   :  { %v2799_v3 = vpop.permute.xlu0 %2006  ;;  %1877 = vmatpush.msk.msra.mxu0 %vm458_vm2, %v333_v51  ;;  %v430_v51 = vrot.slane %v263_v43, 4  ;;  %v360_v43 = vrot.slane %v163_v10, 4  ;;  %v2856_v10 = vpop.permute.xlu2 %326 }
  0xc2   :  { %v2009_v15 = vunpack.i.h.bf16 %v2799_v3  ;;  %v2008_v17 = vunpack.i.l.bf16 %v2799_v3  ;;  %v334_v37 = vsel %vm328_vm10, %v2856_v10, %v2781_v49 }
  0xc3   :  { %546 = vmatpush.msra.mxu0 %v491_v19 }
  0xc4   :  { %v298_v46 = vsel %vm294_vm8, %v2004_v6, %v2008_v17  ;;  %v297_v32 = vsel %vm294_vm8, %v2008_v17, %v2009_v15  ;;  %v480_v6 = vsel %vm458_vm2, %v393_v22, %v411_v2  ;;  %v487_v22 = vsel %vm465_vm7, %v481_v59, %v430_v51  ;;  %v395_v59 = vld.sshfl [vmem:[#allocation1 + $0x18] sm:$0xff pattern:$0x73625140] }
  0xc5   :  { %547 = vmatpush.msra.mxu0 %v473_v26  ;;  %v447_v58 = vrot.slane %v298_v46, 2  ;;  %v448_v41 = vrot.slane %v297_v32, 2  ;;  %v379_v26 = vrot.slane %v196_v33, 2  ;;  %v486_v5 = vsel %vm465_vm7, %v480_v6, %v429_v42 }
  0xc6   :  { %1878 = vmatmul.msk.f32.vlgmr.msra.gmra.mxu0 %vm507_vm11, %v2815_v20  ;;  %v467_v46 = vsel %vm465_vm7, %v460_v13, %v360_v43  ;;  %v2024_v51 = vunpack.i.h.bf16 %v2797_v36  ;;  %v1964_v6 = vunpack.i.h.bf16 %v2676_v35  ;;  %v296_v49 = vsel %vm294_vm8, %v2009_v15, %v2023_v4  ;;  %v397_v43 = vld.sshfl [vmem:[#allocation1 + $0x28] sm:$0xff pattern:$0x73625140] }
  0xc7   :  { %v321_v17 = vpop.permute.xlu1 %320  ;;  %v492_v21 = vsel %vm472_vm9, %v486_v5, %v447_v58  ;;  %v493_v28 = vsel %vm472_vm9, %v487_v22, %v448_v41  ;;  %v449_v31 = vrot.slane %v296_v49, 2 }
  0xc8   :  { %v332_v19 = vsel %vm328_vm10, %v2682_v38, %v321_v17  ;;  %v331_v53 = vsel %vm328_vm10, %v321_v17, %v2712_v55  ;;  %v461_v38 = vsel %vm458_vm2, %v2745_v8, %v343_v16  ;;  %v2871_v8 = vsel %vm124_vm0, %v1948_v45, %v1949_v12 }
  0xc9   :  { %v2012_v2 = vpop.permute.xlu0 %2011  ;;  %1880 = vmatpush.msk.msra.mxu1 %vm458_vm2, %v332_v19  ;;  %1883 = vmatpush.msk.msra.mxu2 %vm458_vm2, %v331_v53  ;;  %v468_v32 = vsel %vm465_vm7, %v461_v38, %v361_v60  ;;  %v474_v16 = vsel %vm472_vm9, %v467_v46, %v378_v23  ;;  %v1968_v12 = vunpack.i.l.bf16 %v2665_v29  ;;  %v300_v60 = vsel %vm294_vm8, %v2024_v51, %v2003_v7 }
  0xca   :  { %v2014_v50 = vunpack.i.h.bf16 %v2012_v2  ;;  %v2013_v47 = vunpack.i.l.bf16 %v2012_v2  ;;  %v475_v42 = vsel %vm472_vm9, %v468_v32, %v379_v26  ;;  %v161_v29 = vsel %vm158_vm4, %v1963_v40, %v1964_v6  ;;  %v396_v2 = vld.sshfl [vmem:[#allocation1 + $0x20] sm:$0xff pattern:$0x73625140] }
  0xcb   :  { %569 = vmatpush.msra.mxu1 %v492_v21  ;;  %592 = vmatpush.msra.mxu2 %v493_v28  ;;  %v159_v17 = vsel %vm158_vm4, %v1968_v12, %v1969_v56  ;;  %v362_v22 = vrot.slane %v161_v29, 4  ;;  %v295_v25 = vsel %vm294_vm8, %v2023_v4, %v2024_v51  ;;  %v160_v32 = vsel %vm158_vm4, %v1964_v6, %v1968_v12 }
  0xcc   :  { %v232_v33 = vsel %vm226_vm3, %v2014_v50, %v1983_v44  ;;  %v228_v9 = vsel %vm226_vm3, %v1989_v14, %v2013_v47  ;;  %v344_v44 = vrot.slane %v2871_v8, 6  ;;  %v227_v13 = vsel %vm226_vm3, %v2013_v47, %v2014_v50 }
  0xcd   :  { %570 = vmatpush.msra.mxu1 %v474_v16  ;;  %593 = vmatpush.msra.mxu2 %v475_v42  ;;  %v415_v54 = vrot.slane %v232_v33, 6  ;;  %v413_v14 = vrot.slane %v228_v9, 6  ;;  %v414_v35 = vrot.slane %v227_v13, 6  ;;  %v364_v5 = vrot.slane %v159_v17, 4 }
  0xce   :  { %1879 = vmatmul.msk.f32.gmra.mxu0 %vm507_vm11, %v2863_v57  ;;  %1881 = vmatmul.msk.f32.vlgmr.msra.gmra.mxu1 %vm507_vm11, %v2815_v20  ;;  %v450_v42 = vrot.slane %v295_v25, 2  ;;  %v363_v12 = vrot.slane %v160_v32, 4 }
  0xcf   :  { %1884 = vmatmul.msk.f32.vlgmr.msra.gmra.mxu2 %vm507_vm11, %v2815_v20  ;;  %1892 = vmatpush.msk.msrb.mxu1 %vm458_vm2, %v334_v37  ;;  %v2017_v45 = vpop.permute.xlu1 %2016  ;;  %v482_v34 = vsel %vm458_vm2, %v395_v59, %v413_v14  ;;  %v483_v21 = vsel %vm458_vm2, %v396_v2, %v414_v35  ;;  %v471_v33 = vsel %vm465_vm7, %v2656_v24, %v364_v5 }
  0xd0   :  { %v2019_v36 = vunpack.i.h.bf16 %v2017_v45  ;;  %v2018_v58 = vunpack.i.l.bf16 %v2017_v45 }
  0xd1   :  { %v325_v41 = vpop.permute.xlu0 %324 }
  0xd2   :  { %v266_v3 = vsel %vm260_vm5, %v2019_v36, %v1993_v48  ;;  %v262_v62 = vsel %vm260_vm5, %v1999_v18, %v2018_v58  ;;  %v330_v15 = vsel %vm328_vm10, %v2712_v55, %v325_v41  ;;  %v451_v48 = vrot.slane %v300_v60, 2 }
  0xd3   :  { %v433_v7 = vrot.slane %v266_v3, 4  ;;  %v431_v56 = vrot.slane %v262_v62, 4  ;;  %1886 = vmatpush.msk.msrb.mxu0 %vm458_vm2, %v330_v15  ;;  %1913 = vmatpush.msk.msra.mxu3 %vm458_vm2, %v330_v15  ;;  %v484_v18 = vsel %vm458_vm2, %v397_v43, %v415_v54  ;;  %v261_v40 = vsel %vm260_vm5, %v2018_v58, %v2019_v36 }
  0xd4   :  { %v93_v55 = vsel %vm90_vm1, %v1933_v52, %v1934_v27  ;;  %v432_v50 = vrot.slane %v261_v40, 4  ;;  %v329_v39 = vsel %vm328_vm10, %v325_v41, %v2856_v10  ;;  %v470_v10 = vsel %vm465_vm7, %v2668_v30, %v363_v12  ;;  %v2996_v30 = vld [vmem:[%s4637_s3] sm:$0x3f] }
  0xd5   :  { %v488_v19 = vsel %vm465_vm7, %v482_v34, %v431_v56  ;;  %v490_v53 = vsel %vm465_vm7, %v484_v18, %v433_v7  ;;  %v462_v47 = vsel %vm458_vm2, %v93_v55, %v344_v44  ;;  %v3005_v49 = vperm.slane %v2996_v30, 1 }
  0xd6   :  { %1882 = vmatmul.msk.f32.gmra.mxu1 %vm507_vm11, %v2863_v57  ;;  %v494_v23 = vsel %vm472_vm9, %v488_v19, %v449_v31  ;;  %v496_v26 = vsel %vm472_vm9, %v490_v53, %v451_v48  ;;  %v469_v4 = vsel %vm465_vm7, %v462_v47, %v362_v22  ;;  %v3039_v53 = vperm.slane %v2996_v30, 2 }
  0xd7   :  { %1885 = vmatmul.msk.f32.gmra.mxu2 %vm507_vm11, %v2863_v57  ;;  %v2027_v38 = vpop.permute.xlu1 %2026  ;;  %615 = vmatpush.msrb.mxu0 %v494_v23  ;;  %4736 = vst [vmem:[#allocation6_spill] sm:$0xff] %v3005_v49  ;;  %v3067_v47 = vperm.slane %v2996_v30, 3 }
  0xd8   :  { %v2029_v27 = vunpack.i.h.bf16 %v2027_v38  ;;  %v2028_v52 = vunpack.i.l.bf16 %v2027_v38  ;;  %1914 = vmatpush.msra.mxu3 %v494_v23  ;;  %661 = vmatpush.msrb.mxu1 %v496_v26  ;;  %4737 = vst [vmem:[#allocation7_spill] sm:$0xff] %v3039_v53 }
  0xd9   :  { %v2990_v54 = vpop.permute.xlu0 %499  ;;  %4738 = vst [vmem:[#allocation8_spill] sm:$0xff] %v3067_v47 }
  0xda   :  { %v195_v28 = vsel %vm192_vm6, %v1979_v63, %v2028_v52  ;;  %v193_v46 = vsel %vm192_vm6, %v2029_v27, %v1978_v61  ;;  %v194_v51 = vsel %vm192_vm6, %v2028_v52, %v2029_v27  ;;  %v489_v63 = vsel %vm465_vm7, %v483_v21, %v432_v50 }
  0xdb   :  { %v380_v8 = vrot.slane %v195_v28, 2  ;;  %v382_v16 = vrot.slane %v193_v46, 2  ;;  %v495_v37 = vsel %vm472_vm9, %v489_v63, %v450_v42  ;;  %v381_v24 = vrot.slane %v194_v51, 2 }
  0xdd   :  { %v476_v61 = vsel %vm472_vm9, %v469_v4, %v380_v8  ;;  %v478_v9 = vsel %vm472_vm9, %v471_v33, %v382_v16  ;;  %v477_v44 = vsel %vm472_vm9, %v470_v10, %v381_v24 }
  0xde   :  { %616 = vmatpush.msrb.mxu0 %v476_v61  ;;  %1915 = vmatpush.msra.mxu3 %v476_v61 }
  0xdf   :  { %662 = vmatpush.msrb.mxu1 %v478_v9  ;;  %1887 = vmatmul.msk.f32.vlgmr.msrb.gmra.mxu0 %vm507_vm11, %v2815_v20  ;;  %v2998_v36 = vpop.permute.xlu1 %504 }
  0xe0   :  { %1888 = vmatmul.msk.f32.vlgmr.msra.gmra.mxu3 %vm507_vm11, %v2863_v57  ;;  %1889 = vmatpush.msk.msra.mxu0 %vm458_vm2, %v329_v39  ;;  %v3089_v39 = vperm.slane %v2996_v30, 5 }
  0xe1   :  { %1893 = vmatmul.msk.f32.vlgmr.msrb.gmra.mxu1 %vm507_vm11, %v2815_v20 }
  0xe2   :  { %638 = vmatpush.msra.mxu0 %v495_v37  ;;  %4739 = vst [vmem:[#allocation9_spill] sm:$0xff] %v3089_v39 }
  0xe4   :  { %639 = vmatpush.msra.mxu0 %v477_v44 }
  0xe7   :  { %1890 = vmatmul.msk.f32.vlgmr.msra.gmra.mxu0 %vm507_vm11, %v2815_v20  ;;  %v3001_v20 = vperm.slane %v2996_v30, 0 }
  0xe9   :  { %1894 = vmatmul.msk.f32.gmra.mxu1 %vm507_vm11, %v2863_v57  ;;  %4735 = vst [vmem:[#allocation5_spill] sm:$0xff] %v3001_v20 }
  0xef   :  { %1891 = vmatmul.msk.f32.gmra.mxu0 %vm507_vm11, %v2863_v57 }
 0x143   :  { %v549_v45 = vpop.f32.mrf.mxu0 }
 0x144   :  { %v550_v14 = vadd.f32 %v549_v45, %v2990_v54 }
 0x146   :  { %v670_v58 = vmax.f32 %v550_v14, 0.0 }
 0x148   :  { %v3009_v43 = vmul.f32 %v670_v58, %v3001_v20 }
 0x14b   :  { %v552_v6 = vpop.f32.mrf.mxu0  ;;  %v572_v41 = vpop.f32.mrf.mxu1 }
 0x14c   :  { %v553_v57 = vadd.f32 %v552_v6, %v2998_v36  ;;  %v573_v59 = vadd.f32 %v572_v41, %v2990_v54  ;;  %v3114_v6 = vperm.slane %v2996_v30, 4 }
 0x14e   :  { %v676_v60 = vmax.f32 %v553_v57, 0.0  ;;  %v671_v17 = vmax.f32 %v573_v59, 0.0  ;;  %4740 = vst [vmem:[#allocation10_spill] sm:$0xff] %v3114_v6 }
 0x150   :  { %v3012_v13 = vmul.f32 %v676_v60, %v3001_v20  ;;  %v3015_v3 = vmul.f32 %v671_v17, %v3005_v49 }
 0x152   :  { %v595_v62 = vpop.f32.mrf.mxu2  ;;  %v2047_v29 = vpack.i.bf16 %v3012_v13, %v3009_v43  ;;  %v3021_v7 = vpack.i.bf16 %v3015_v3, %v3009_v43 }
 0x153   :  { %v575_v56 = vpop.f32.mrf.mxu1  ;;  %v596_v34 = vadd.f32 %v595_v62, %v2990_v54 }
 0x154   :  { %v576_v15 = vadd.f32 %v575_v56, %v2998_v36  ;;  %2048 = vrot.lane.b32.xlu2 %v2047_v29, %s2513_s17  ;;  %2033 = vrot.lane.b32.xlu0 %v3021_v7, %s2519_s22 }
 0x155   :  { %v672_v55 = vmax.f32 %v596_v34, 0.0 }
 0x156   :  { %v677_v31 = vmax.f32 %v576_v15, 0.0 }
 0x157   :  { %v3050_v2 = vmul.f32 %v672_v55, %v3039_v53 }
 0x158   :  { %v3029_v48 = vmul.f32 %v677_v31, %v3005_v49 }
 0x15a   :  { %v598_v18 = vpop.f32.mrf.mxu2  ;;  %v2052_v35 = vpack.i.bf16 %v3029_v48, %v3015_v3  ;;  %v3035_v40 = vpack.i.bf16 %v3029_v48, %v3012_v13  ;;  %v2092_v63 = vpack.i.bf16 %v3015_v3, %v3029_v48 }
 0x15b   :  { %v599_v19 = vadd.f32 %v598_v18, %v2998_v36 }
 0x15c   :  { %2053 = vrot.lane.b32.xlu1 %v2052_v35, %s2513_s17  ;;  %2078 = vrot.lane.b32.xlu2 %v3035_v40, %s2519_s22  ;;  %v618_v38 = vpop.f32.mrf.mxu0 }
 0x15d   :  { %v678_v23 = vmax.f32 %v599_v19, 0.0  ;;  %2038 = vrot.lane.b32.xlu0 %v3021_v7, %s2518_s21  ;;  %v619_v27 = vadd.f32 %v618_v38, %v2990_v54 }
 0x15e   :  { %v664_v50 = vpop.f32.mrf.mxu1 }
 0x15f   :  { %v3047_v26 = vmul.f32 %v678_v23, %v3039_v53  ;;  %v673_v21 = vmax.f32 %v619_v27, 0.0  ;;  %v665_v51 = vadd.f32 %v664_v50, %v2990_v54 }
 0x161   :  { %v2097_v5 = vpack.i.bf16 %v3047_v26, %v3050_v2  ;;  %v3074_v46 = vmul.f32 %v673_v21, %v3067_v47  ;;  %v2112_v32 = vpack.i.bf16 %v3050_v2, %v3047_v26  ;;  %v675_v61 = vmax.f32 %v665_v51, 0.0 }
 0x163   :  { %v621_v22 = vpop.f32.mrf.mxu3  ;;  %v3098_v12 = vmul.f32 %v675_v61, %v3089_v39  ;;  %v2217_v34 = vpack.i.bf16 %v3074_v46, %v3050_v2 }
 0x164   :  { %2063 = vrot.lane.b32.xlu1 %v2052_v35, %s2514_s1  ;;  %2098 = vrot.lane.b32.xlu2 %v2097_v5, %s2513_s17  ;;  %v622_v25 = vadd.f32 %v621_v22, %v2998_v36  ;;  %v641_v4 = vpop.f32.mrf.mxu0  ;;  %v2247_v22 = vpack.i.bf16 %v3074_v46, %v3047_v26 }
 0x165   :  { %2043 = vrot.lane.b32.xlu0 %v3021_v7, %s2517_s20  ;;  %v642_v44 = vadd.f32 %v641_v4, %v2990_v54  ;;  %v2142_v14 = vpack.i.bf16 %v3098_v12, %v3009_v43 }
 0x166   :  { %v679_v52 = vmax.f32 %v622_v25, 0.0  ;;  %v667_v8 = vpop.f32.mrf.mxu1 }
 0x167   :  { %v668_v42 = vadd.f32 %v667_v8, %v2998_v36  ;;  %v674_v41 = vmax.f32 %v642_v44, 0.0 }
 0x168   :  { %v3071_v28 = vmul.f32 %v679_v52, %v3067_v47 }
 0x169   :  { %v681_v33 = vmax.f32 %v668_v42, 0.0 }
 0x16a   :  { %v2127_v16 = vpack.i.bf16 %v3071_v28, %v3074_v46  ;;  %v2207_v17 = vpack.i.bf16 %v3071_v28, %v3047_v26 }
 0x16b   :  { %v3095_v9 = vmul.f32 %v681_v33, %v3089_v39 }
 0x16c   :  { %2073 = vrot.lane.b32.xlu1 %v2052_v35, %s2515_s18  ;;  %2103 = vrot.lane.b32.xlu2 %v2097_v5, %s2514_s1  ;;  %v644_v24 = vpop.f32.mrf.mxu0 }
 0x16d   :  { %2058 = vrot.lane.b32.xlu0 %v2047_v29, %s2514_s1  ;;  %v2147_v37 = vpack.i.bf16 %v3095_v9, %v3098_v12  ;;  %v645_v10 = vadd.f32 %v644_v24, %v2998_v36  ;;  %v3111_v58 = vpack.i.bf16 %v3098_v12, %v3095_v9  ;;  %v3124_v36 = vmul.f32 %v674_v41, %v3114_v6 }
 0x16e   :  { %v2157_v30 = vpack.i.bf16 %v3095_v9, %v3012_v13 }
 0x16f   :  { %v680_v45 = vmax.f32 %v645_v10, 0.0  ;;  %v2162_v60 = vpack.i.bf16 %v3124_v36, %v3074_v46  ;;  %v2252_v35 = vpack.i.bf16 %v3050_v2, %v3124_v36 }
 0x171   :  { %v3121_v54 = vmul.f32 %v680_v45, %v3114_v6 }
 0x173   :  { %v2172_v57 = vpack.i.bf16 %v3121_v54, %v3124_v36  ;;  %v2187_v59 = vpack.i.bf16 %v3121_v54, %v3071_v28 }
 0x174   :  { %2083 = vrot.lane.b32.xlu1 %v3035_v40, %s2518_s21  ;;  %2108 = vrot.lane.b32.xlu2 %v2097_v5, %s2515_s18 }
 0x175   :  { %2068 = vrot.lane.b32.xlu0 %v2047_v29, %s2515_s18 }
 0x17c   :  { %2088 = vrot.lane.b32.xlu1 %v3035_v40, %s2517_s20  ;;  %2113 = vrot.lane.b32.xlu2 %v2112_v32, %s2519_s22 }
 0x17d   :  { %2128 = vrot.lane.b32.xlu0 %v2127_v16, %s2513_s17 }
 0x184   :  { %2093 = vrot.lane.b32.xlu1 %v2092_v63, %s2516_s19  ;;  %2118 = vrot.lane.b32.xlu2 %v2112_v32, %s2518_s21  ;;  %v2262_v63 = vpack.i.bf16 %v3124_v36, %v3121_v54 }
 0x185   :  { %2133 = vrot.lane.b32.xlu0 %v2127_v16, %s2514_s1 }
 0x18c   :  { %2123 = vrot.lane.b32.xlu1 %v2112_v32, %s2517_s20  ;;  %2148 = vrot.lane.b32.xlu2 %v2147_v37, %s2513_s17 }
 0x18d   :  { %2138 = vrot.lane.b32.xlu0 %v2127_v16, %s2515_s18 }
 0x194   :  { %2143 = vrot.lane.b32.xlu1 %v2142_v14, %s2516_s19  ;;  %2153 = vrot.lane.b32.xlu2 %v2147_v37, %s2514_s1  ;;  %v698_v14 = vld [vmem:[%s4638_s7] sm:$0xff] }
 0x195   :  { %2168 = vrot.lane.b32.xlu0 %v3111_v58, %s2515_s18 }
 0x19c   :  { %2173 = vrot.lane.b32.xlu1 %v2172_v57, %s2513_s17  ;;  %2158 = vrot.lane.b32.xlu2 %v2157_v30, %s2516_s19 }
 0x19d   :  { %2188 = vrot.lane.b32.xlu0 %v2187_v59, %s2519_s22 }
 0x1a4   :  { %2178 = vrot.lane.b32.xlu1 %v2172_v57, %s2514_s1  ;;  %2163 = vrot.lane.b32.xlu2 %v2162_v60, %s2519_s22 }
 0x1a5   :  { %2193 = vrot.lane.b32.xlu0 %v2162_v60, %s2518_s21 }
 0x1ac   :  { %2183 = vrot.lane.b32.xlu1 %v2172_v57, %s2515_s18  ;;  %2198 = vrot.lane.b32.xlu2 %v2187_v59, %s2518_s21 }
 0x1ad   :  { %2208 = vrot.lane.b32.xlu0 %v2207_v17, %s2516_s19 }
 0x1ae   :  { %v3145_v62 = vpop.permute.xlu2 %2048 }
 0x1af   :  { %v4659_v38 = vunpack.i.h.bf16 %v3145_v62  ;;  %v4658_v25 = vunpack.i.l.bf16 %v3145_v62 }
 0x1b4   :  { %2213 = vrot.lane.b32.xlu1 %v2187_v59, %s2517_s20  ;;  %2203 = vrot.lane.b32.xlu2 %v2162_v60, %s2517_s20 }
 0x1b5   :  { %2228 = vrot.lane.b32.xlu0 %v3111_v58, %s2518_s21 }
 0x1b6   :  { %v3151_v29 = vpop.permute.xlu2 %2078 }
 0x1b7   :  { %v2081_v56 = vunpack.i.h.bf16 %v3151_v29  ;;  %v4649_v15 = vunpack.i.l.bf16 %v3151_v29 }
 0x1b9   :  { %v949_v31 = vsel %vm294_vm8, %v4649_v15, %v2081_v56 }
 0x1ba   :  { %1005 = vmatpush.msrb.mxu2 %v949_v31 }
 0x1bc   :  { %2218 = vrot.lane.b32.xlu1 %v2217_v34, %s2516_s19  ;;  %2223 = vrot.lane.b32.xlu2 %v3111_v58, %s2519_s22 }
 0x1bd   :  { %2243 = vrot.lane.b32.xlu0 %v3021_v7, %s2520_s23 }
 0x1be   :  { %v3166_v18 = vpop.permute.xlu2 %2098 }
 0x1bf   :  { %v2101_v52 = vunpack.i.h.bf16 %v3166_v18  ;;  %v2100_v21 = vunpack.i.l.bf16 %v3166_v18 }
 0x1c4   :  { %2233 = vrot.lane.b32.xlu1 %v3111_v58, %s2517_s20  ;;  %2238 = vrot.lane.b32.xlu2 %v3035_v40, %s2520_s23  ;;  %v699_v40 = vld [vmem:[%s4638_s7 + $0x8] sm:$0xff] }
 0x1c5   :  { %2253 = vrot.lane.b32.xlu0 %v2252_v35, %s2520_s23 }
 0x1c6   :  { %v3175_v19 = vpop.permute.xlu2 %2103  ;;  %v3177_v55 = vpop.permute.xlu0 %2033 }
 0x1c7   :  { %v2036_v23 = vunpack.i.h.bf16 %v3177_v55  ;;  %v4648_v7 = vunpack.i.l.bf16 %v3177_v55 }
 0x1c9   :  { %v948_v5 = vsel %vm294_vm8, %v4648_v7, %v2036_v23 }
 0x1ca   :  { %1006 = vmatpush.msrb.mxu2 %v948_v5 }
 0x1cc   :  { %2258 = vrot.lane.b32.xlu1 %v2187_v59, %s2520_s23  ;;  %2248 = vrot.lane.b32.xlu2 %v2247_v22, %s2520_s23 }
 0x1cd   :  { %995 = vperm.xlu0 %2030, %v699_v40  }
 0x1ce   :  { %v2054_v50 = vpop.permute.xlu1 %2053  ;;  %v3194_v27 = vpop.permute.xlu2 %2108 }
 0x1cf   :  { %v2056_v32 = vunpack.i.h.bf16 %v2054_v50  ;;  %v2055_v8 = vunpack.i.l.bf16 %v2054_v50  ;;  %v3198_v16 = vpop.permute.xlu0 %2038 }
 0x1d0   :  { %v2041_v59 = vunpack.i.h.bf16 %v3198_v16  ;;  %v4645_v60 = vunpack.i.l.bf16 %v3198_v16 }
 0x1d1   :  { %v3204_v42 = vsel %vm90_vm1, %v4659_v38, %v2056_v32  ;;  %v3210_v51 = vsel %vm90_vm1, %v4658_v25, %v2055_v8  ;;  %v3214_v4 = vsel %vm90_vm1, %v2056_v32, %v2101_v52  ;;  %v3218_v33 = vsel %vm90_vm1, %v2055_v8, %v2100_v21 }
 0x1d2   :  { %v912_v40 = vsel %vm260_vm5, %v4645_v60, %v2041_v59 }
 0x1d4   :  { %2263 = vrot.lane.b32.xlu1 %v2262_v63, %s2516_s19  ;;  %2268 = vrot.lane.b32.xlu2 %v3111_v58, %s2520_s23 }
 0x1d6   :  { %v3225_v61 = vpop.permute.xlu1 %2063  ;;  %v3227_v37 = vpop.permute.xlu2 %2113 }
 0x1d7   :  { %v4653_v24 = vunpack.i.h.bf16 %v3227_v37  ;;  %v4656_v10 = vunpack.i.l.bf16 %v3227_v37  ;;  %v3231_v44 = vpop.permute.xlu0 %2043 }
 0x1d8   :  { %v2046_v63 = vunpack.i.h.bf16 %v3231_v44 }
 0x1d9   :  { %v947_v45 = vsel %vm294_vm8, %v2081_v56, %v4656_v10  ;;  %v946_v58 = vsel %vm294_vm8, %v2036_v23, %v4653_v24 }
 0x1da   :  { %1051 = vmatpush.msrb.mxu0 %v947_v45  ;;  %v4650_v45 = vunpack.i.l.bf16 %v3231_v44 }
 0x1dc   :  { %990 = vperm.xlu1 %2031, %v698_v14   ;;  %1052 = vmatpush.msrb.mxu0 %v946_v58  ;;  %v876_v60 = vsel %vm226_vm3, %v4650_v45, %v2046_v63 }
 0x1de   :  { %v3244_v41 = vpop.permute.xlu1 %2073  ;;  %v3246_v57 = vpop.permute.xlu2 %2118 }
 0x1df   :  { %v3248_v30 = vpop.permute.xlu0 %2058  ;;  %v4651_v31 = vunpack.i.h.bf16 %v3246_v57  ;;  %v4652_v34 = vunpack.i.l.bf16 %v3246_v57 }
 0x1e1   :  { %v910_v50 = vsel %vm260_vm5, %v2041_v59, %v4651_v31 }
 0x1e6   :  { %v3252_v17 = vpop.permute.xlu1 %2083  ;;  %v3254_v56 = vpop.permute.xlu2 %2148 }
 0x1e7   :  { %v2086_v18 = vunpack.i.h.bf16 %v3252_v17  ;;  %v4647_v35 = vunpack.i.l.bf16 %v3252_v17  ;;  %v3260_v23 = vpop.permute.xlu0 %2068 }
 0x1e9   :  { %v913_v5 = vsel %vm260_vm5, %v4647_v35, %v2086_v18  ;;  %v911_v22 = vsel %vm260_vm5, %v2086_v18, %v4652_v34 }
 0x1ea   :  { %1007 = vmatpush.msrb.mxu2 %v913_v5  ;;  %1053 = vmatpush.msrb.mxu0 %v911_v22 }
 0x1ec   :  { %1008 = vmatpush.msrb.mxu2 %v912_v40  ;;  %1054 = vmatpush.msrb.mxu0 %v910_v50 }
 0x1ee   :  { %v3278_v32 = vpop.permute.xlu1 %2088  ;;  %v3280_v8 = vpop.permute.xlu2 %2153 }
 0x1ef   :  { %v2091_v14 = vunpack.i.h.bf16 %v3278_v32  ;;  %v4646_v58 = vunpack.i.l.bf16 %v3278_v32  ;;  %v3286_v18 = vpop.permute.xlu0 %2128 }
 0x1f0   :  { %v4663_v5 = vunpack.i.h.bf16 %v3286_v18  ;;  %v4662_v59 = vunpack.i.l.bf16 %v3286_v18 }
 0x1f1   :  { %v877_v22 = vsel %vm226_vm3, %v4646_v58, %v2091_v14 }
 0x1f2   :  { %1009 = vmatpush.msrb.mxu2 %v877_v22  ;;  %v3298_v40 = vsel %vm90_vm1, %v2101_v52, %v4663_v5  ;;  %v3304_v50 = vsel %vm90_vm1, %v2100_v21, %v4662_v59  ;;  %v4655_v21 = vunpack.i.l.bf16 %v3175_v19  ;;  %v4670_v59 = vunpack.i.h.bf16 %v3244_v41 }
 0x1f4   :  { %1010 = vmatpush.msrb.mxu2 %v876_v60 }
 0x1f6   :  { %v3310_v58 = vpop.permute.xlu1 %2093  ;;  %v3312_v22 = vpop.permute.xlu2 %2158  ;;  %1011 = vmatpush.msrb.mxu2 %v3012_v13 }
 0x1f7   :  { %v4654_v52 = vunpack.i.h.bf16 %v3312_v22  ;;  %v2160_v35 = vunpack.i.l.bf16 %v3312_v22  ;;  %v3317_v7 = vpop.permute.xlu0 %2133 }
 0x1f8   :  { %v4657_v15 = vunpack.i.l.bf16 %v3317_v7  ;;  %1012 = vmatpush.msrb.mxu2 %v3009_v43 }
 0x1f9   :  { %v843_v60 = vsel %vm192_vm6, %v4654_v52, %v2160_v35 }
 0x1fa   :  { %1013 = vmatpush.msrb.mxu2 %v843_v60  ;;  %v3332_v13 = vsel %vm124_vm0, %v4655_v21, %v4657_v15  ;;  %v4665_v21 = vunpack.i.l.bf16 %v3310_v58 }
 0x1fe   :  { %v3334_v45 = vpop.permute.xlu1 %2123  ;;  %v3336_v31 = vpop.permute.xlu2 %2163 }
 0x1ff   :  { %v4661_v43 = vunpack.i.h.bf16 %v3334_v45  ;;  %v4660_v34 = vunpack.i.l.bf16 %v3334_v45  ;;  %v3340_v24 = vpop.permute.xlu0 %2138 }
 0x201   :  { %v875_v60 = vsel %vm226_vm3, %v2091_v14, %v4660_v34  ;;  %v874_v52 = vsel %vm226_vm3, %v2046_v63, %v4661_v43  ;;  %v4667_v63 = vunpack.i.h.bf16 %v3310_v58  ;;  %v841_v43 = vsel %vm192_vm6, %v2160_v35, %v4665_v21 }
 0x202   :  { %1055 = vmatpush.msrb.mxu0 %v875_v60  ;;  %v2071_v60 = vunpack.i.h.bf16 %v3260_v23  ;;  %v2061_v35 = vunpack.i.h.bf16 %v3248_v30 }
 0x204   :  { %1056 = vmatpush.msrb.mxu0 %v874_v52 }
 0x206   :  { %v3351_v10 = vpop.permute.xlu1 %2143  ;;  %v3353_v15 = vpop.permute.xlu2 %2198  ;;  %1057 = vmatpush.msrb.mxu0 %v3029_v48 }
 0x207   :  { %v4664_v25 = vunpack.i.h.bf16 %v3351_v10  ;;  %v2145_v38 = vunpack.i.l.bf16 %v3351_v10  ;;  %v3358_v14 = vpop.permute.xlu0 %2168 }
 0x208   :  { %v4666_v34 = vunpack.i.l.bf16 %v3358_v14  ;;  %1058 = vmatpush.msrb.mxu0 %v3015_v3  ;;  %v2070_v3 = vunpack.i.l.bf16 %v3260_v23  ;;  %v2155_v23 = vunpack.i.l.bf16 %v3280_v8 }
 0x209   :  { %v842_v48 = vsel %vm192_vm6, %v4664_v25, %v2145_v38  ;;  %v840_v25 = vsel %vm192_vm6, %v2145_v38, %v4667_v63  ;;  %v2060_v63 = vunpack.i.l.bf16 %v3248_v30  ;;  %v4675_v38 = vunpack.i.l.bf16 %v3225_v61 }
 0x20a   :  { %1014 = vmatpush.msrb.mxu2 %v842_v48  ;;  %1059 = vmatpush.msrb.mxu0 %v841_v43  ;;  %v807_v52 = vsel %vm158_vm4, %v4666_v34, %v2071_v60  ;;  %v4741_v48 = vunpack.i.h.bf16 %v3358_v14  ;;  %v805_v34 = vsel %vm158_vm4, %v2071_v60, %v4670_v59  ;;  %v4743_v59 = vunpack.i.l.bf16 %v3244_v41 }
 0x20b   :  { %v770_v39 = vsel %vm124_vm0, %v2155_v23, %v2060_v63 }
 0x20c   :  { %1015 = vmatpush.msrb.mxu2 %v807_v52  ;;  %1060 = vmatpush.msrb.mxu0 %v840_v25  ;;  %v806_v21 = vsel %vm158_vm4, %v4741_v48, %v2070_v3  ;;  %v2151_v25 = vunpack.i.h.bf16 %v3254_v56  ;;  %v4742_v48 = vunpack.i.h.bf16 %v3280_v8  ;;  %v804_v30 = vsel %vm158_vm4, %v2070_v3, %v4743_v59 }
 0x20d   :  { %v4748_v3 = vunpack.i.l.bf16 %v3286_v18 }
 0x20e   :  { %v2174_v52 = vpop.permute.xlu1 %2173  ;;  %v3398_v43 = vpop.permute.xlu2 %2203  ;;  %1016 = vmatpush.msrb.mxu2 %v806_v21  ;;  %1061 = vmatpush.msrb.mxu0 %v805_v34  ;;  %v771_v60 = vsel %vm124_vm0, %v4742_v48, %v2061_v35  ;;  %v4744_v34 = vunpack.i.h.bf16 %v3225_v61  ;;  %v4745_v48 = vunpack.i.h.bf16 %v3286_v18  ;;  %v3451_v18 = vld [vmem:[%s4639_s6] sm:$0xff] }
 0x20f   :  { %v2176_v5 = vunpack.i.h.bf16 %v2174_v52  ;;  %v2175_v0 = vunpack.i.l.bf16 %v2174_v52  ;;  %v3400_v1 = vpop.permute.xlu0 %2188  ;;  %v2150_v52 = vunpack.i.l.bf16 %v3254_v56  ;;  %v768_v56 = vsel %vm124_vm0, %v2060_v63, %v4675_v38 }
 0x210   :  { %1017 = vmatpush.msrb.mxu2 %v771_v60  ;;  %1062 = vmatpush.msrb.mxu0 %v804_v30  ;;  %v769_v21 = vsel %vm124_vm0, %v2061_v35, %v4744_v34  ;;  %v4676_v60 = vunpack.i.h.bf16 %v3400_v1  ;;  %v4677_v30 = vunpack.i.l.bf16 %v3400_v1  ;;  %v4681_v63 = vunpack.i.h.bf16 %v3336_v31 }
 0x211   :  { %v3422_v47 = vsel %vm90_vm1, %v4745_v48, %v2176_v5  ;;  %v3426_v59 = vsel %vm90_vm1, %v2176_v5, %v2151_v25  ;;  %v3436_v35 = vsel %vm90_vm1, %v4748_v3, %v2175_v0  ;;  %v4750_v5 = vunpack.i.h.bf16 %v3145_v62 }
 0x212   :  { %4746 = vst [vmem:[#allocation11_spill] sm:$0xff] %v3422_v47  ;;  %1018 = vmatpush.msrb.mxu2 %v770_v39  ;;  %1063 = vmatpush.msrb.mxu0 %v769_v21  ;;  %v3446_v34 = vsel %vm90_vm1, %v2175_v0, %v2150_v52  ;;  %v4752_v48 = vunpack.i.l.bf16 %v3145_v62  ;;  %v4680_v3 = vunpack.i.h.bf16 %v3353_v15  ;;  %v943_v62 = vsel %vm294_vm8, %v4677_v30, %v4676_v60 }
 0x213   :  { %4747 = vst [vmem:[#allocation12_spill] sm:$0xff] %v3426_v59  ;;  %v735_v39 = vsel %vm90_vm1, %v2151_v25, %v4750_v5  ;;  %v4756_v30 = vunpack.i.l.bf16 %v3317_v7  ;;  %v4763_v47 = vunpack.i.l.bf16 %v3336_v31 }
 0x214   :  { %4749 = vst [vmem:[#allocation13_spill] sm:$0xff] %v3436_v35  ;;  %1019 = vmatpush.msrb.mxu2 %v735_v39  ;;  %1064 = vmatpush.msrb.mxu0 %v768_v56  ;;  %v734_v25 = vsel %vm90_vm1, %v2150_v52, %v4752_v48  ;;  %v4753_v48 = vunpack.i.l.bf16 %v3336_v31  ;;  %v4754_v56 = vunpack.i.h.bf16 %v3280_v8 }
 0x215   :  { %4751 = vst [vmem:[#allocation14_spill] sm:$0xff] %v3446_v34 }
 0x216   :  { %v3460_v0 = vpop.permute.xlu1 %2178  ;;  %v3462_v5 = vpop.permute.xlu2 %2223  ;;  %1020 = vmatpush.msrb.mxu2 %v734_v25  ;;  %1065 = vmatpush.msrb.mxu0 %v3204_v42  ;;  %v942_v25 = vsel %vm294_vm8, %v4753_v48, %v4681_v63  ;;  %v4695_v63 = vunpack.i.l.bf16 %v3398_v43 }
 0x217   :  { %v4678_v39 = vunpack.i.h.bf16 %v3460_v0  ;;  %v2180_v38 = vunpack.i.l.bf16 %v3460_v0  ;;  %v3468_v21 = vpop.permute.xlu0 %2193  ;;  %1021 = vmatmul.f32.vlgmr.msrb.gmra.mxu2 %v3451_v18 }
 0x218   :  { %1143 = vmatpush.msra.mxu2 %v943_v62  ;;  %1066 = vmatpush.msrb.mxu0 %v3210_v51  ;;  %v4679_v42 = vunpack.i.h.bf16 %v3468_v21  ;;  %v4682_v52 = vunpack.i.l.bf16 %v3468_v21  ;;  %v4755_v62 = vunpack.i.l.bf16 %v3353_v15 }
 0x219   :  { %1067 = vmatmul.f32.vlgmr.msrb.gmra.mxu0 %v3451_v18  ;;  %v3493_v51 = vsel %vm124_vm0, %v4678_v39, %v4754_v56  ;;  %v3505_v48 = vsel %vm124_vm0, %v4756_v30, %v2180_v38  ;;  %v3509_v8 = vsel %vm124_vm0, %v2180_v38, %v2155_v23  ;;  %v3514_v56 = vld [vmem:[%s4639_s6 + $0x10] sm:$0xff] }
 0x21a   :  { %1144 = vmatpush.msra.mxu2 %v942_v25  ;;  %v907_v60 = vsel %vm260_vm5, %v4755_v62, %v4680_v3  ;;  %4757 = vst [vmem:[#allocation15_spill] sm:$0xff] %v3505_v48  ;;  %v906_v25 = vsel %vm260_vm5, %v4682_v52, %v4679_v42  ;;  %v4770_v48 = vunpack.i.h.bf16 %v3246_v57 }
 0x21b   :  { %4758 = vst [vmem:[#allocation16_spill] sm:$0xff] %v3509_v8  ;;  %v4764_v8 = vunpack.i.h.bf16 %v3227_v37 }
 0x21c   :  { %1145 = vmatpush.msra.mxu2 %v907_v60 }
 0x21e   :  { %1146 = vmatpush.msra.mxu2 %v906_v25  ;;  %v3522_v30 = vpop.permute.xlu1 %2183  ;;  %v3524_v62 = vpop.permute.xlu2 %2238  ;;  %v4694_v25 = vunpack.i.h.bf16 %v3398_v43 }
 0x21f   :  { %v2241_v23 = vunpack.i.h.bf16 %v3524_v62  ;;  %v4689_v38 = vunpack.i.l.bf16 %v3524_v62  ;;  %v3528_v60 = vpop.permute.xlu0 %2208  ;;  %1024 = vmatmul.f32.gmra.mxu2 %v3514_v56 }
 0x220   :  { %v870_v20 = vsel %vm226_vm3, %v4695_v63, %v4694_v25  ;;  %v4696_v34 = vunpack.i.h.bf16 %v3528_v60  ;;  %v4697_v35 = vunpack.i.l.bf16 %v3528_v60  ;;  %v3583_v25 = vld [vmem:[%s4639_s6 + $0x8] sm:$0xff]  ;;  %v4761_v63 = vunpack.i.h.bf16 %v3340_v24 }
 0x221   :  { %1070 = vmatmul.f32.gmra.mxu0 %v3514_v56  ;;  %v985_v39 = vsel %vm328_vm10, %v4689_v38, %v2241_v23 }
 0x222   :  { %1042 = vmatpush.msrb.mxu3 %v985_v39 }
 0x226   :  { %v3537_v42 = vpop.permute.xlu1 %2213  ;;  %v3539_v3 = vpop.permute.xlu2 %2248 }
 0x227   :  { %v4692_v52 = vunpack.i.h.bf16 %v3537_v42  ;;  %v2215_v6 = vunpack.i.l.bf16 %v3537_v42  ;;  %v4693_v53 = vunpack.i.l.bf16 %v3539_v3  ;;  %v3545_v49 = vpop.permute.xlu0 %2228 }
 0x229   :  { %v983_v39 = vsel %vm328_vm10, %v2241_v23, %v4693_v53  ;;  %v871_v38 = vsel %vm226_vm3, %v2215_v6, %v4692_v52 }
 0x22a   :  { %1088 = vmatpush.msra.mxu1 %v983_v39  ;;  %1147 = vmatpush.msra.mxu2 %v871_v38 }
 0x22c   :  { %1148 = vmatpush.msra.mxu2 %v870_v20  ;;  %v4765_v20 = vunpack.i.l.bf16 %v3340_v24 }
 0x22e   :  { %v3563_v23 = vpop.permute.xlu1 %2218  ;;  %1149 = vmatpush.msra.mxu2 %v3071_v28  ;;  %v837_v28 = vsel %vm192_vm6, %v4697_v35, %v4696_v34  ;;  %v4759_v35 = vunpack.i.l.bf16 %v3400_v1 }
 0x22f   :  { %v4699_v52 = vunpack.i.h.bf16 %v3563_v23  ;;  %v4700_v38 = vunpack.i.l.bf16 %v3563_v23  ;;  %v3568_v39 = vpop.permute.xlu0 %2243 }
 0x230   :  { %v2246_v53 = vunpack.i.h.bf16 %v3568_v39  ;;  %v4698_v59 = vunpack.i.l.bf16 %v3568_v39  ;;  %1150 = vmatpush.msra.mxu2 %v3074_v46 }
 0x231   :  { %v836_v34 = vsel %vm192_vm6, %v4700_v38, %v4699_v52  ;;  %v4762_v52 = vunpack.i.h.bf16 %v3194_v27 }
 0x232   :  { %v984_v46 = vsel %vm328_vm10, %v4698_v59, %v2246_v53  ;;  %1151 = vmatpush.msra.mxu2 %v837_v28  ;;  %v4760_v59 = vunpack.i.l.bf16 %v3227_v37 }
 0x233   :  { %1043 = vmatpush.msrb.mxu3 %v984_v46  ;;  %v4701_v46 = vunpack.i.l.bf16 %v3194_v27  ;;  %v801_v38 = vsel %vm158_vm4, %v4762_v52, %v4761_v63  ;;  %v4766_v52 = vunpack.i.l.bf16 %v3353_v15 }
 0x234   :  { %1895 = vmatmul.msk.f32.vlgmr.msrb.gmra.mxu3 %vm998_vm12, %v3583_v25  ;;  %v945_v28 = vsel %vm294_vm8, %v4760_v59, %v4759_v35  ;;  %1152 = vmatpush.msra.mxu2 %v836_v34  ;;  %v944_v59 = vsel %vm294_vm8, %v4764_v8, %v4763_v47  ;;  %v2106_v34 = vunpack.i.h.bf16 %v3175_v19  ;;  %v4767_v47 = vunpack.i.l.bf16 %v3246_v57 }
 0x235   :  { %1097 = vmatpush.msra.mxu3 %v945_v28  ;;  %v800_v63 = vsel %vm158_vm4, %v4701_v46, %v4765_v20  ;;  %v3646_v20 = vld [vmem:[%s4639_s6 + $0x18] sm:$0xff]  ;;  %v4769_v46 = vunpack.i.l.bf16 %v3468_v21 }
 0x236   :  { %v3619_v35 = vpop.permute.xlu1 %2233  ;;  %1153 = vmatpush.msra.mxu2 %v801_v38  ;;  %v909_v8 = vsel %vm260_vm5, %v4767_v47, %v4766_v52  ;;  %v4768_v38 = vunpack.i.h.bf16 %v3317_v7  ;;  %v3656_v47 = vpop.permute.xlu2 %2268 }
 0x237   :  { %1098 = vmatpush.msra.mxu3 %v944_v59  ;;  %v3622_v28 = vpop.permute.xlu0 %2253 }
 0x238   :  { %v2256_v37 = vunpack.i.h.bf16 %v3622_v28  ;;  %1154 = vmatpush.msra.mxu2 %v800_v63  ;;  %v765_v59 = vsel %vm124_vm0, %v2106_v34, %v4768_v38  ;;  %v908_v63 = vsel %vm260_vm5, %v4770_v48, %v4769_v46  ;;  %v4772_v48 = vunpack.i.l.bf16 %v3398_v43 }
 0x239   :  { %1099 = vmatpush.msra.mxu3 %v909_v8  ;;  %v4771_v8 = vunpack.i.l.bf16 %v3334_v45  ;;  %v4773_v46 = vunpack.i.h.bf16 %v3334_v45  ;;  %v4774_v45 = vunpack.i.l.bf16 %v3539_v3 }
 0x23a   :  { %v982_v52 = vsel %vm328_vm10, %v2246_v53, %v2256_v37  ;;  %1155 = vmatpush.msra.mxu2 %v765_v59  ;;  %v2270_v53 = vunpack.i.l.bf16 %v3656_v47 }
 0x23b   :  { %1100 = vmatpush.msra.mxu3 %v908_v63  ;;  %1089 = vmatpush.msra.mxu1 %v982_v52  ;;  %v873_v57 = vsel %vm226_vm3, %v4771_v8, %v2215_v6  ;;  %v872_v38 = vsel %vm226_vm3, %v4773_v46, %v4772_v48  ;;  %v2271_v6 = vunpack.i.h.bf16 %v3656_v47  ;;  %v4775_v48 = vunpack.i.l.bf16 %v3524_v62 }
 0x23c   :  { %1896 = vmatmul.msk.f32.gmra.mxu3 %vm998_vm12, %v3646_v20  ;;  %1897 = vmatmul.msk.f32.vlgmr.msra.gmra.mxu1 %vm998_vm12, %v3583_v25  ;;  %v2226_v46 = vunpack.i.h.bf16 %v3462_v5  ;;  %v4777_v62 = vunpack.i.l.bf16 %v3310_v58  ;;  %v4802_v47 = vunpack.i.h.bf16 %v3563_v23 }
 0x23d   :  { %1101 = vmatpush.msra.mxu3 %v873_v57  ;;  %1156 = vmatpush.msra.mxu2 %v3332_v13  ;;  %v2255_v13 = vunpack.i.l.bf16 %v3622_v28  ;;  %v2185_v28 = vunpack.i.l.bf16 %v3522_v30 }
 0x23e   :  { %v3674_v59 = vpop.permute.xlu1 %2258 }
 0x23f   :  { %1102 = vmatpush.msra.mxu3 %v872_v38  ;;  %v2261_v63 = vunpack.i.h.bf16 %v3674_v59  ;;  %v2260_v52 = vunpack.i.l.bf16 %v3674_v59  ;;  %1157 = vmatpush.msra.mxu2 %v3298_v40  ;;  %v2225_v40 = vunpack.i.l.bf16 %v3462_v5  ;;  %v4776_v38 = vunpack.i.l.bf16 %v3528_v60 }
 0x241   :  { %1103 = vmatpush.msra.mxu3 %v3047_v26  ;;  %1158 = vmatpush.msra.mxu2 %v3304_v50  ;;  %v981_v8 = vsel %vm328_vm10, %v4774_v45, %v2260_v52  ;;  %v979_v57 = vsel %vm328_vm10, %v2260_v52, %v2261_v63  ;;  %v987_v26 = vsel %vm328_vm10, %v2270_v53, %v4775_v48  ;;  %v2251_v50 = vunpack.i.h.bf16 %v3539_v3 }
 0x242   :  { %1159 = vmatmul.f32.vlgmr.msra.gmra.mxu2 %v3451_v18  ;;  %1134 = vmatpush.msrb.mxu1 %v981_v8  ;;  %v839_v52 = vsel %vm192_vm6, %v4777_v62, %v4776_v38  ;;  %v4778_v45 = vunpack.i.l.bf16 %v3568_v39  ;;  %v4779_v8 = vunpack.i.l.bf16 %v3563_v23  ;;  %v4780_v39 = vunpack.i.h.bf16 %v3310_v58 }
 0x243   :  { %1104 = vmatpush.msra.mxu3 %v3050_v2  ;;  %1272 = vmatpush.msrb.mxu2 %v987_v26  ;;  %v980_v3 = vsel %vm328_vm10, %v2256_v37, %v2251_v50  ;;  %v978_v5 = vsel %vm328_vm10, %v2251_v50, %v2255_v13  ;;  %v4781_v48 = vunpack.i.h.bf16 %v3400_v1  ;;  %v2230_v37 = vunpack.i.l.bf16 %v3545_v49 }
 0x244   :  { %1180 = vmatpush.msra.mxu0 %v979_v57  ;;  %1898 = vmatmul.msk.f32.gmra.mxu1 %vm998_vm12, %v3646_v20  ;;  %v986_v2 = vsel %vm328_vm10, %v2271_v6, %v4778_v45  ;;  %v838_v57 = vsel %vm192_vm6, %v4780_v39, %v4779_v8  ;;  %v4782_v50 = vunpack.i.l.bf16 %v3151_v29  ;;  %v4783_v58 = vunpack.i.h.bf16 %v3194_v27 }
 0x245   :  { %1105 = vmatpush.msra.mxu3 %v839_v52  ;;  %1273 = vmatpush.msrb.mxu2 %v986_v2  ;;  %v941_v26 = vsel %vm294_vm8, %v4781_v48, %v2225_v40  ;;  %v4784_v62 = vunpack.i.h.bf16 %v3244_v41  ;;  %v4785_v52 = vunpack.i.h.bf16 %v3336_v31  ;;  %v2231_v2 = vunpack.i.h.bf16 %v3545_v49 }
 0x246   :  { %1135 = vmatpush.msrb.mxu1 %v980_v3  ;;  %1181 = vmatpush.msra.mxu0 %v978_v5  ;;  %v951_v38 = vsel %vm294_vm8, %v2225_v40, %v4782_v50  ;;  %v4786_v29 = vunpack.i.l.bf16 %v3177_v55  ;;  %v4787_v3 = vunpack.i.l.bf16 %v3194_v27  ;;  %v4788_v5 = vunpack.i.l.bf16 %v3244_v41 }
 0x247   :  { %1106 = vmatpush.msra.mxu3 %v838_v57  ;;  %v803_v1 = vsel %vm158_vm4, %v4784_v62, %v4783_v58  ;;  %v940_v45 = vsel %vm294_vm8, %v4785_v52, %v2226_v46  ;;  %v2235_v8 = vunpack.i.l.bf16 %v3619_v35  ;;  %1901 = vmatmul.msk.f32.vlgmr.msra.gmra.mxu0 %vm998_vm12, %v3583_v25  ;;  %v4789_v49 = vunpack.i.h.bf16 %v3353_v15  ;;  %v2264_v58 = vpop.permute.xlu1 %2263 }
 0x248   :  { %1189 = vmatpush.msra.mxu1 %v941_v26  ;;  %1235 = vmatpush.msrb.mxu0 %v951_v38  ;;  %v950_v40 = vsel %vm294_vm8, %v2226_v46, %v4786_v29  ;;  %v802_v31 = vsel %vm158_vm4, %v4788_v5, %v4787_v3  ;;  %v4790_v27 = vunpack.i.l.bf16 %v3252_v17  ;;  %v4791_v46 = vunpack.i.h.bf16 %v3225_v61  ;;  %v4812_v29 = vld [vmem:[#allocation11_spill] sm:$0xff] }
 0x249   :  { %1107 = vmatpush.msra.mxu3 %v803_v1  ;;  %v905_v55 = vsel %vm260_vm5, %v4789_v49, %v2230_v37  ;;  %v2236_v57 = vunpack.i.h.bf16 %v3619_v35  ;;  %v4792_v15 = vunpack.i.h.bf16 %v3468_v21  ;;  %v4793_v48 = vunpack.i.l.bf16 %v3198_v16 }
 0x24a   :  { %1190 = vmatpush.msra.mxu1 %v940_v45  ;;  %1236 = vmatpush.msrb.mxu0 %v950_v40  ;;  %v915_v41 = vsel %vm260_vm5, %v2230_v37, %v4790_v27  ;;  %v767_v39 = vsel %vm124_vm0, %v4791_v46, %v2106_v34  ;;  %v4794_v34 = vunpack.i.l.bf16 %v3175_v19  ;;  %v4795_v35 = vunpack.i.l.bf16 %v3225_v61  ;;  %v4813_v40 = vld [vmem:[#allocation12_spill] sm:$0xff] }
 0x24b   :  { %1162 = vmatmul.f32.gmra.mxu2 %v3514_v56  ;;  %1108 = vmatpush.msra.mxu3 %v802_v31  ;;  %v904_v17 = vsel %vm260_vm5, %v4792_v15, %v2231_v2  ;;  %v914_v26 = vsel %vm260_vm5, %v2231_v2, %v4793_v48  ;;  %v4796_v37 = vunpack.i.h.bf16 %v3537_v42  ;;  %v4797_v50 = vunpack.i.l.bf16 %v3278_v32 }
 0x24c   :  { %1191 = vmatpush.msra.mxu1 %v905_v55  ;;  %1237 = vmatpush.msrb.mxu0 %v915_v41  ;;  %v766_v21 = vsel %vm124_vm0, %v4795_v35, %v4794_v34  ;;  %v4798_v19 = vunpack.i.h.bf16 %v3398_v43  ;;  %v4799_v42 = vunpack.i.l.bf16 %v3231_v44  ;;  %v2265_v32 = vunpack.i.l.bf16 %v2264_v58 }
 0x24d   :  { %1109 = vmatpush.msra.mxu3 %v767_v39  ;;  %1899 = vmatmul.msk.f32.vlgmr.msrb.gmra.mxu1 %vm998_vm12, %v3583_v25  ;;  %v869_v16 = vsel %vm226_vm3, %v4796_v37, %v2235_v8  ;;  %v879_v38 = vsel %vm226_vm3, %v2235_v8, %v4797_v50  ;;  %v977_v44 = vsel %vm328_vm10, %v2261_v63, %v2270_v53  ;;  %v4803_v53 = vunpack.i.h.bf16 %v3351_v10  ;;  %v3896_v39 = vpop.permute.xlu0 %995 }
 0x24e   :  { %1192 = vmatpush.msra.mxu1 %v904_v17  ;;  %1238 = vmatpush.msrb.mxu0 %v914_v26  ;;  %v868_v61 = vsel %vm226_vm3, %v4798_v19, %v2236_v57  ;;  %v878_v62 = vsel %vm226_vm3, %v2236_v57, %v4799_v42  ;;  %v4806_v10 = vunpack.i.l.bf16 %v3340_v24  ;;  %v4808_v52 = vunpack.i.h.bf16 %v3460_v0  ;;  %v4815_v0 = vld [vmem:[#allocation14_spill] sm:$0xff]  ;;  %v4816_v57 = vld [vmem:[#allocation5_spill] sm:$0xff] }
 0x24f   :  { %1110 = vmatpush.msra.mxu3 %v766_v21  ;;  %1902 = vmatmul.msk.f32.gmra.mxu0 %vm998_vm12, %v3646_v20  ;;  %v4809_v45 = vunpack.i.h.bf16 %v3317_v7  ;;  %v4814_v7 = vld [vmem:[#allocation13_spill] sm:$0xff]  ;;  %v3892_v5 = vpop.permute.xlu1 %990  ;;  %v4817_v17 = vld [vmem:[#allocation6_spill] sm:$0xff] }
 0x250   :  { %1193 = vmatpush.msra.mxu1 %v869_v16  ;;  %1239 = vmatpush.msrb.mxu0 %v879_v38 }
 0x251   :  { %1111 = vmatpush.msra.mxu3 %v3214_v4  ;;  %v2266_v4 = vunpack.i.h.bf16 %v2264_v58  ;;  %v763_v2 = vsel %vm124_vm0, %v4809_v45, %v4808_v52 }
 0x252   :  { %1194 = vmatpush.msra.mxu1 %v868_v61  ;;  %1240 = vmatpush.msrb.mxu0 %v878_v62 }
 0x253   :  { %1112 = vmatpush.msra.mxu3 %v3218_v33  ;;  %v4800_v33 = vunpack.i.h.bf16 %v3528_v60  ;;  %1905 = vmatmul.msk.f32.vlgmr.msrb.gmra.mxu2 %vm998_vm12, %v3583_v25  ;;  %v834_v60 = vsel %vm192_vm6, %v4802_v47, %v2266_v4  ;;  %v832_v59 = vsel %vm192_vm6, %v2266_v4, %v4803_v53 }
 0x254   :  { %1195 = vmatpush.msra.mxu1 %v3121_v54  ;;  %1241 = vmatpush.msrb.mxu0 %v3095_v9  ;;  %v2186_v54 = vunpack.i.h.bf16 %v3522_v30  ;;  %v976_v9 = vsel %vm328_vm10, %v2255_v13, %v2271_v6  ;;  %v4805_v30 = vunpack.i.l.bf16 %v3358_v14  ;;  %v798_v6 = vsel %vm158_vm4, %v4806_v10, %v2185_v28 }
 0x255   :  { %1113 = vmatmul.f32.vlgmr.msra.gmra.mxu3 %v3451_v18  ;;  %1900 = vmatmul.msk.f32.gmra.mxu1 %vm998_vm12, %v3646_v20  ;;  %v835_v43 = vsel %vm192_vm6, %v4800_v33, %v2265_v32  ;;  %v4807_v13 = vunpack.i.h.bf16 %v3358_v14  ;;  %v4811_v14 = vld [vmem:[#allocation16_spill] sm:$0xff] }
 0x256   :  { %1226 = vmatpush.msrb.mxu3 %v977_v44  ;;  %1196 = vmatpush.msra.mxu1 %v3124_v36  ;;  %v4801_v36 = vunpack.i.h.bf16 %v3312_v22  ;;  %v4804_v22 = vunpack.i.h.bf16 %v3340_v24  ;;  %v797_v23 = vsel %vm158_vm4, %v2186_v54, %v4805_v30  ;;  %v4810_v24 = vld [vmem:[#allocation15_spill] sm:$0xff] }
 0x257   :  { %1242 = vmatpush.msrb.mxu0 %v3098_v12  ;;  %v796_v1 = vsel %vm158_vm4, %v2185_v28, %v4807_v13 }
 0x258   :  { %1227 = vmatpush.msrb.mxu3 %v976_v9  ;;  %1197 = vmatpush.msra.mxu1 %v835_v43  ;;  %v833_v12 = vsel %vm192_vm6, %v2265_v32, %v4801_v36  ;;  %v799_v63 = vsel %vm158_vm4, %v4804_v22, %v2186_v54  ;;  %v4818_v22 = vld [vmem:[#allocation7_spill] sm:$0xff] }
 0x259   :  { %1243 = vmatpush.msrb.mxu0 %v833_v12 }
 0x25a   :  { %1198 = vmatpush.msra.mxu1 %v834_v60 }
 0x25b   :  { %1244 = vmatpush.msrb.mxu0 %v832_v59  ;;  %1906 = vmatmul.msk.f32.gmra.mxu2 %vm998_vm12, %v3646_v20 }
 0x25c   :  { %1199 = vmatpush.msra.mxu1 %v799_v63 }
 0x25d   :  { %1245 = vmatpush.msrb.mxu0 %v797_v23  ;;  %1116 = vmatmul.f32.gmra.mxu3 %v3514_v56 }
 0x25e   :  { %1200 = vmatpush.msra.mxu1 %v798_v6 }
 0x25f   :  { %1246 = vmatpush.msrb.mxu0 %v796_v1 }
 0x260   :  { %1201 = vmatpush.msra.mxu1 %v763_v2 }
 0x261   :  { %1247 = vmatpush.msrb.mxu0 %v3493_v51 }
 0x262   :  { %1202 = vmatpush.msra.mxu1 %v4810_v24 }
 0x263   :  { %1248 = vmatpush.msrb.mxu0 %v4811_v14 }
 0x264   :  { %1203 = vmatpush.msra.mxu1 %v4812_v29 }
 0x265   :  { %1249 = vmatpush.msrb.mxu0 %v4813_v40  ;;  %1903 = vmatmul.msk.f32.vlgmr.msrb.gmra.mxu3 %vm998_vm12, %v3583_v25 }
 0x266   :  { %1204 = vmatpush.msra.mxu1 %v4814_v7 }
 0x267   :  { %1250 = vmatpush.msrb.mxu0 %v4815_v0  ;;  %1205 = vmatmul.f32.vlgmr.msra.gmra.mxu1 %v3451_v18 }
 0x268   :  { %1251 = vmatmul.f32.vlgmr.msrb.gmra.mxu0 %v3451_v18 }
 0x26d   :  { %1904 = vmatmul.msk.f32.gmra.mxu3 %vm998_vm12, %v3646_v20 }
 0x26f   :  { %1208 = vmatmul.f32.gmra.mxu1 %v3514_v56 }
 0x270   :  { %1254 = vmatmul.f32.gmra.mxu0 %v3514_v56 }
 0x296   :  { %v1068_v3 = vpop.f32.mrf.mxu0 }
 0x297   :  { %v1069_v8 = vadd.f32 %v1068_v3, %v3892_v5 }
 0x29a   :  { %v1022_v51 = vpop.f32.mrf.mxu2 }
 0x29b   :  { %v1023_v25 = vadd.f32 %v1022_v51, %v3892_v5 }
 0x29e   :  { %v1071_v46 = vpop.f32.mrf.mxu0 }
 0x29f   :  { %v1072_v26 = vadd.f32 %v1071_v46, %v3896_v39 }
 0x2a2   :  { %v1025_v41 = vpop.f32.mrf.mxu2 }
 0x2a3   :  { %v1026_v56 = vadd.f32 %v1025_v41, %v3896_v39 }
 0x2b7   :  { %v1045_v31 = vpop.f32.mrf.mxu3 }
 0x2b8   :  { %v1046_v49 = vadd.f32 %v1045_v31, %v1023_v25 }
 0x2b9   :  { %v1091_v55 = vpop.f32.mrf.mxu1 }
 0x2ba   :  { %v1281_v27 = vmax.f32 %v1046_v49, 0.0  ;;  %v1092_v18 = vadd.f32 %v1091_v55, %v1069_v8 }
 0x2bc   :  { %v1282_v20 = vmax.f32 %v1092_v18, 0.0  ;;  %v3900_v15 = vmul.f32 %v1281_v27, %v4816_v57  ;;  %v4819_v27 = vld [vmem:[#allocation10_spill] sm:$0xff] }
 0x2be   :  { %v3903_v48 = vmul.f32 %v1282_v20, %v4817_v17 }
 0x2bf   :  { %v1048_v34 = vpop.f32.mrf.mxu3 }
 0x2c0   :  { %v1049_v35 = vadd.f32 %v1048_v34, %v1026_v56  ;;  %v3908_v21 = vpack.i.bf16 %v3903_v48, %v3900_v15 }
 0x2c1   :  { %v1094_v37 = vpop.f32.mrf.mxu1 }
 0x2c2   :  { %v1287_v16 = vmax.f32 %v1049_v35, 0.0  ;;  %v1095_v50 = vadd.f32 %v1094_v37, %v1072_v26  ;;  %2283 = vrot.lane.b32.xlu1 %v3908_v21, %s2517_s20  ;;  %2278 = vrot.lane.b32.xlu2 %v3908_v21, %s2518_s21 }
 0x2c3   :  { %2273 = vrot.lane.b32.xlu0 %v3908_v21, %s2519_s22 }
 0x2c4   :  { %v3917_v38 = vmul.f32 %v1287_v16, %v4816_v57  ;;  %v1288_v58 = vmax.f32 %v1095_v50, 0.0  ;;  %v1183_v44 = vpop.f32.mrf.mxu0  ;;  %v4821_v50 = vld [vmem:[#allocation9_spill] sm:$0xff] }
 0x2c5   :  { %v1160_v33 = vpop.f32.mrf.mxu2 }
 0x2c6   :  { %v3920_v19 = vmul.f32 %v1288_v58, %v4817_v17  ;;  %v2287_v42 = vpack.i.bf16 %v3917_v38, %v3900_v15  ;;  %v1161_v1 = vadd.f32 %v1160_v33, %v3892_v5 }
 0x2c8   :  { %v2302_v61 = vpack.i.bf16 %v3920_v19, %v3917_v38  ;;  %v2292_v62 = vpack.i.bf16 %v3920_v19, %v3903_v48  ;;  %v1184_v14 = vadd.f32 %v1183_v44, %v1161_v1 }
 0x2ca   :  { %2303 = vrot.lane.b32.xlu1 %v2302_v61, %s2518_s21  ;;  %2288 = vrot.lane.b32.xlu2 %v2287_v42, %s2513_s17  ;;  %v1137_v32 = vpop.f32.mrf.mxu1  ;;  %v1284_v31 = vmax.f32 %v1184_v14, 0.0 }
 0x2cb   :  { %2293 = vrot.lane.b32.xlu0 %v2292_v62, %s2513_s17 }
 0x2cc   :  { %v1186_v60 = vpop.f32.mrf.mxu0 }
 0x2ce   :  { %v1163_v23 = vpop.f32.mrf.mxu2 }
 0x2cf   :  { %v1164_v29 = vadd.f32 %v1163_v23, %v3896_v39 }
 0x2d1   :  { %v1187_v8 = vadd.f32 %v1186_v60, %v1164_v29 }
 0x2d2   :  { %2298 = vrot.lane.b32.xlu2 %v2302_v61, %s2519_s22  ;;  %v1140_v54 = vpop.f32.mrf.mxu1 }
 0x2d3   :  { %2308 = vrot.lane.b32.xlu0 %v2302_v61, %s2517_s20  ;;  %v1290_v56 = vmax.f32 %v1187_v8, 0.0 }
 0x2d6   :  { %v1275_v0 = vpop.f32.mrf.mxu2 }
 0x2d8   :  { %v1114_v4 = vpop.f32.mrf.mxu3 }
 0x2d9   :  { %v1115_v9 = vadd.f32 %v1114_v4, %v3892_v5 }
 0x2da   :  { %2313 = vrot.lane.b32.xlu2 %v2302_v61, %s2520_s23 }
 0x2db   :  { %v1138_v43 = vadd.f32 %v1137_v32, %v1115_v9 }
 0x2dd   :  { %v1283_v28 = vmax.f32 %v1138_v43, 0.0 }
 0x2de   :  { %v1278_v37 = vpop.f32.mrf.mxu2 }
 0x2df   :  { %v3937_v63 = vmul.f32 %v1283_v28, %v4818_v22 }
 0x2e0   :  { %v1117_v36 = vpop.f32.mrf.mxu3 }
 0x2e1   :  { %v1118_v12 = vadd.f32 %v1117_v36, %v3896_v39  ;;  %v2447_v36 = vpack.i.bf16 %v3903_v48, %v3920_v19 }
 0x2e3   :  { %v1141_v47 = vadd.f32 %v1140_v54, %v1118_v12 }
 0x2e4   :  { %v1206_v53 = vpop.f32.mrf.mxu1 }
 0x2e5   :  { %v1289_v59 = vmax.f32 %v1141_v47, 0.0  ;;  %v1207_v52 = vadd.f32 %v1206_v53, %v3892_v5  ;;  %v1252_v45 = vpop.f32.mrf.mxu0 }
 0x2e6   :  { %v1253_v7 = vadd.f32 %v1252_v45, %v3892_v5  ;;  %v4820_v5 = vld [vmem:[#allocation8_spill] sm:$0xff] }
 0x2e7   :  { %v3940_v30 = vmul.f32 %v1289_v59, %v4818_v22  ;;  %v3962_v20 = vmul.f32 %v1284_v31, %v4820_v5  ;;  %v3973_v16 = vmul.f32 %v1290_v56, %v4820_v5 }
 0x2e8   :  { %v1229_v10 = vpop.f32.mrf.mxu3  ;;  %v1276_v55 = vadd.f32 %v1275_v0, %v1253_v7 }
 0x2e9   :  { %v2317_v6 = vpack.i.bf16 %v3940_v30, %v3937_v63  ;;  %v2327_v13 = vpack.i.bf16 %v3937_v63, %v3940_v30  ;;  %v1230_v24 = vadd.f32 %v1229_v10, %v1207_v52  ;;  %v2337_v35 = vpack.i.bf16 %v3962_v20, %v3937_v63 }
 0x2ea   :  { %v1286_v17 = vmax.f32 %v1276_v55, 0.0  ;;  %v2357_v61 = vpack.i.bf16 %v3973_v16, %v3962_v20  ;;  %v2362_v44 = vpack.i.bf16 %v3973_v16, %v3940_v30 }
 0x2eb   :  { %2318 = vrot.lane.b32.xlu1 %v2317_v6, %s2513_s17  ;;  %2328 = vrot.lane.b32.xlu0 %v2327_v13, %s2518_s21  ;;  %v1285_v3 = vmax.f32 %v1230_v24, 0.0 }
 0x2ec   :  { %v1209_v2 = vpop.f32.mrf.mxu1  ;;  %v3978_v58 = vmul.f32 %v1286_v17, %v4821_v50 }
 0x2ed   :  { %v1210_v40 = vadd.f32 %v1209_v2, %v3896_v39  ;;  %v3956_v18 = vmul.f32 %v1285_v3, %v4819_v27  ;;  %v1255_v46 = vpop.f32.mrf.mxu0 }
 0x2ee   :  { %v1256_v26 = vadd.f32 %v1255_v46, %v3896_v39  ;;  %v2377_v62 = vpack.i.bf16 %v3978_v58, %v3900_v15 }
 0x2ef   :  { %v2432_v33 = vpack.i.bf16 %v3956_v18, %v3978_v58  ;;  %v2457_v24 = vpack.i.bf16 %v3962_v20, %v3956_v18 }
 0x2f0   :  { %v1232_v51 = vpop.f32.mrf.mxu3  ;;  %v1279_v39 = vadd.f32 %v1278_v37, %v1256_v26 }
 0x2f1   :  { %v1233_v25 = vadd.f32 %v1232_v51, %v1210_v40 }
 0x2f2   :  { %v1292_v42 = vmax.f32 %v1279_v39, 0.0 }
 0x2f3   :  { %v1291_v49 = vmax.f32 %v1233_v25, 0.0  ;;  %2323 = vrot.lane.b32.xlu1 %v2327_v13, %s2519_s22  ;;  %2333 = vrot.lane.b32.xlu0 %v2327_v13, %s2517_s20 }
 0x2f4   :  { %v3990_v4 = vmul.f32 %v1292_v42, %v4821_v50 }
 0x2f5   :  { %v3959_v41 = vmul.f32 %v1291_v49, %v4819_v27  ;;  %v2452_v49 = vpack.i.bf16 %v3973_v16, %v3937_v63 }
 0x2f6   :  { %v2382_v54 = vpack.i.bf16 %v3990_v4, %v3978_v58  ;;  %v2397_v9 = vpack.i.bf16 %v3990_v4, %v3917_v38  ;;  %v2462_v28 = vpack.i.bf16 %v3990_v4, %v3973_v16 }
 0x2f7   :  { %v2347_v57 = vpack.i.bf16 %v3956_v18, %v3959_v41  ;;  %v2352_v34 = vpack.i.bf16 %v3959_v41, %v3962_v20  ;;  %v2342_v32 = vpack.i.bf16 %v3959_v41, %v3956_v18  ;;  %v2442_v59 = vpack.i.bf16 %v3959_v41, %v3940_v30 }
 0x2f9   :  { %2348 = vrot.lane.b32.xlu2 %v2347_v57, %s2520_s23 }
 0x2fb   :  { %2353 = vrot.lane.b32.xlu1 %v2352_v34, %s2519_s22  ;;  %2338 = vrot.lane.b32.xlu0 %v2337_v35, %s2520_s23  ;;  %v2492_v35 = vpack.i.bf16 %v3978_v58, %v3990_v4 }
 0x301   :  { %2358 = vrot.lane.b32.xlu2 %v2357_v61, %s2513_s17 }
 0x303   :  { %2378 = vrot.lane.b32.xlu1 %v2377_v62, %s2514_s1  ;;  %2343 = vrot.lane.b32.xlu0 %v2342_v32, %s2513_s17 }
 0x309   :  { %2363 = vrot.lane.b32.xlu2 %v2362_v44, %s2520_s23 }
 0x30b   :  { %2383 = vrot.lane.b32.xlu1 %v2382_v54, %s2513_s17  ;;  %2368 = vrot.lane.b32.xlu0 %v2377_v62, %s2516_s19 }
 0x311   :  { %2373 = vrot.lane.b32.xlu2 %v2377_v62, %s2515_s18 }
 0x313   :  { %2398 = vrot.lane.b32.xlu1 %v2397_v9, %s2515_s18  ;;  %2403 = vrot.lane.b32.xlu0 %v2397_v9, %s2514_s1 }
 0x319   :  { %2388 = vrot.lane.b32.xlu2 %v2397_v9, %s2516_s19 }
 0x31b   :  { %2433 = vrot.lane.b32.xlu1 %v2432_v33, %s2517_s20  ;;  %2408 = vrot.lane.b32.xlu0 %v3908_v21, %s2520_s23 }
 0x31c   :  { %v4010_v43 = vpop.permute.xlu2 %2278 }
 0x31d   :  { %v2281_v29 = vunpack.i.h.bf16 %v4010_v43  ;;  %v4711_v40 = vunpack.i.l.bf16 %v4010_v43 }
 0x31f   :  { %v1519_v5 = vsel %vm260_vm5, %v4711_v40, %v2281_v29 }
 0x321   :  { %2393 = vrot.lane.b32.xlu2 %v2432_v33, %s2519_s22 }
 0x323   :  { %2448 = vrot.lane.b32.xlu1 %v2447_v36, %s2514_s1  ;;  %2418 = vrot.lane.b32.xlu0 %v2432_v33, %s2518_s21 }
 0x324   :  { %v4017_v12 = vpop.permute.xlu2 %2288 }
 0x325   :  { %v2291_v3 = vunpack.i.h.bf16 %v4017_v12  ;;  %v2290_v25 = vunpack.i.l.bf16 %v4017_v12 }
 0x329   :  { %2413 = vrot.lane.b32.xlu2 %v2352_v34, %s2518_s21 }
 0x32b   :  { %2463 = vrot.lane.b32.xlu1 %v2462_v28, %s2519_s22  ;;  %2428 = vrot.lane.b32.xlu0 %v2352_v34, %s2517_s20 }
 0x32c   :  { %v4024_v21 = vpop.permute.xlu2 %2298 }
 0x32d   :  { %v2301_v47 = vunpack.i.h.bf16 %v4024_v21  ;;  %v4716_v60 = vunpack.i.l.bf16 %v4024_v21 }
 0x32f   :  { %v1556_v53 = vsel %vm294_vm8, %v4716_v60, %v2301_v47 }
 0x330   :  { %1607 = vmatpush.msra.mxu3 %v1556_v53 }
 0x331   :  { %2423 = vrot.lane.b32.xlu2 %v2447_v36, %s2516_s19 }
 0x333   :  { %2468 = vrot.lane.b32.xlu1 %v2462_v28, %s2518_s21  ;;  %2443 = vrot.lane.b32.xlu0 %v2442_v59, %s2516_s19 }
 0x334   :  { %v4039_v22 = vpop.permute.xlu1 %2283  ;;  %v4041_v23 = vpop.permute.xlu2 %2313 }
 0x335   :  { %v2316_v10 = vunpack.i.h.bf16 %v4041_v23  ;;  %v4704_v6 = vunpack.i.l.bf16 %v4041_v23  ;;  %v4045_v13 = vpop.permute.xlu0 %2273  ;;  %v2286_v26 = vunpack.i.h.bf16 %v4039_v22  ;;  %v4706_v34 = vunpack.i.l.bf16 %v4039_v22 }
 0x336   :  { %v2276_v1 = vunpack.i.h.bf16 %v4045_v13  ;;  %v4713_v52 = vunpack.i.l.bf16 %v4045_v13 }
 0x337   :  { %v1592_v45 = vsel %vm328_vm10, %v4704_v6, %v2316_v10  ;;  %v1483_v50 = vsel %vm226_vm3, %v4706_v34, %v2286_v26 }
 0x338   :  { %v1555_v2 = vsel %vm294_vm8, %v4713_v52, %v2276_v1  ;;  %1641 = vmatpush.msrb.mxu1 %v1592_v45 }
 0x339   :  { %2438 = vrot.lane.b32.xlu2 %v2447_v36, %s2515_s18  ;;  %1608 = vmatpush.msra.mxu3 %v1555_v2 }
 0x33b   :  { %2473 = vrot.lane.b32.xlu1 %v2462_v28, %s2517_s20  ;;  %2458 = vrot.lane.b32.xlu0 %v2457_v24, %s2516_s19 }
 0x33c   :  { %v4066_v14 = vpop.permute.xlu1 %2303 }
 0x33d   :  { %v2306_v7 = vunpack.i.h.bf16 %v4066_v14  ;;  %v4712_v0 = vunpack.i.l.bf16 %v4066_v14  ;;  %v2294_v51 = vpop.permute.xlu0 %2293 }
 0x33e   :  { %v2296_v31 = vunpack.i.h.bf16 %v2294_v51  ;;  %v2295_v8 = vunpack.i.l.bf16 %v2294_v51 }
 0x33f   :  { %v1520_v55 = vsel %vm260_vm5, %v4712_v0, %v2306_v7 }
 0x340   :  { %1609 = vmatpush.msra.mxu3 %v1520_v55  ;;  %v4084_v27 = vsel %vm90_vm1, %v2291_v3, %v2296_v31  ;;  %v4090_v46 = vsel %vm90_vm1, %v2290_v25, %v2295_v8 }
 0x341   :  { %2453 = vrot.lane.b32.xlu2 %v2452_v49, %s2516_s19 }
 0x342   :  { %1610 = vmatpush.msra.mxu3 %v1519_v5 }
 0x343   :  { %2478 = vrot.lane.b32.xlu1 %v2442_v59, %s2515_s18  ;;  %2483 = vrot.lane.b32.xlu0 %v2452_v49, %s2515_s18 }
 0x345   :  { %v4101_v56 = vpop.permute.xlu0 %2308 }
 0x346   :  { %v2311_v57 = vunpack.i.h.bf16 %v4101_v56  ;;  %v4708_v17 = vunpack.i.l.bf16 %v4101_v56 }
 0x348   :  { %v1484_v37 = vsel %vm226_vm3, %v4708_v17, %v2311_v57 }
 0x349   :  { %2493 = vrot.lane.b32.xlu2 %v2492_v35, %s2520_s23  ;;  %1611 = vmatpush.msra.mxu3 %v1484_v37 }
 0x34b   :  { %2488 = vrot.lane.b32.xlu1 %v2457_v24, %s2515_s18  ;;  %2503 = vrot.lane.b32.xlu0 %v2452_v49, %s2514_s1 }
 0x34c   :  { %1612 = vmatpush.msra.mxu3 %v1483_v50 }
 0x34e   :  { %1613 = vmatpush.msra.mxu3 %v3917_v38 }
 0x350   :  { %1614 = vmatpush.msra.mxu3 %v3900_v15 }
 0x351   :  { %2498 = vrot.lane.b32.xlu2 %v2442_v59, %s2514_s1 }
 0x353   :  { %2508 = vrot.lane.b32.xlu1 %v2457_v24, %s2514_s1  ;;  %v4124_v39 = vpop.permute.xlu2 %2348 }
 0x354   :  { %v2350_v12 = vunpack.i.l.bf16 %v4124_v39 }
 0x35b   :  { %v2359_v61 = vpop.permute.xlu2 %2358 }
 0x35c   :  { %v2361_v54 = vunpack.i.h.bf16 %v2359_v61  ;;  %v2360_v9 = vunpack.i.l.bf16 %v2359_v61  ;;  %v1305_v61 = vld [vmem:[%s4640_s8] sm:$0xf] }
 0x35d   :  { %v2319_v42 = vpop.permute.xlu1 %2318  ;;  %v4126_v62 = vpop.permute.xlu0 %2328  ;;  %1601 = vst [vmem:[#allocation1] ss:$4 sm:$0xff] %v1305_v61 }
 0x35e   :  { %v2321_v32 = vunpack.i.h.bf16 %v2319_v42  ;;  %v2320_v44 = vunpack.i.l.bf16 %v2319_v42  ;;  %v4717_v24 = vunpack.i.l.bf16 %v4126_v62 }
 0x360   :  { %v4130_v33 = vsel %vm90_vm1, %v2296_v31, %v2321_v32  ;;  %v4134_v15 = vsel %vm90_vm1, %v2295_v8, %v2320_v44  ;;  %v4138_v38 = vsel %vm90_vm1, %v2321_v32, %v2361_v54  ;;  %v4142_v36 = vsel %vm90_vm1, %v2320_v44, %v2360_v9 }
 0x361   :  { %v4714_v31 = vunpack.i.h.bf16 %v4126_v62 }
 0x363   :  { %v4144_v28 = vpop.permute.xlu2 %2363 }
 0x365   :  { %v4146_v53 = vpop.permute.xlu1 %2323  ;;  %v4148_v59 = vpop.permute.xlu0 %2333 }
 0x366   :  { %v4719_v45 = vunpack.i.h.bf16 %v4146_v53  ;;  %v4720_v2 = vunpack.i.l.bf16 %v4146_v53  ;;  %v4710_v55 = vunpack.i.l.bf16 %v4148_v59  ;;  %v4707_v37 = vunpack.i.h.bf16 %v4148_v59 }
 0x368   :  { %v1554_v51 = vsel %vm294_vm8, %v2301_v47, %v4720_v2  ;;  %v1553_v8 = vsel %vm294_vm8, %v2276_v1, %v4719_v45  ;;  %v1518_v47 = vsel %vm260_vm5, %v2306_v7, %v4717_v24  ;;  %v1517_v1 = vsel %vm260_vm5, %v2281_v29, %v4714_v31 }
 0x369   :  { %1647 = vmatpush.msra.mxu2 %v1554_v51  ;;  %v1482_v7 = vsel %vm226_vm3, %v2311_v57, %v4710_v55  ;;  %v1481_v50 = vsel %vm226_vm3, %v2286_v26, %v4707_v37 }
 0x36b   :  { %v4166_v49 = vpop.permute.xlu2 %2373  ;;  %1648 = vmatpush.msra.mxu2 %v1553_v8 }
 0x36c   :  { %v4723_v6 = vunpack.i.l.bf16 %v4166_v49 }
 0x36d   :  { %v4173_v5 = vpop.permute.xlu1 %2353  ;;  %v4175_v35 = vpop.permute.xlu0 %2338  ;;  %1649 = vmatpush.msra.mxu2 %v1518_v47 }
 0x36f   :  { %1650 = vmatpush.msra.mxu2 %v1517_v1 }
 0x371   :  { %1651 = vmatpush.msra.mxu2 %v1482_v7 }
 0x373   :  { %v4195_v42 = vpop.permute.xlu2 %2388  ;;  %1652 = vmatpush.msra.mxu2 %v1481_v50 }
 0x374   :  { %v4705_v29 = vunpack.i.h.bf16 %v4195_v42  ;;  %v2390_v32 = vunpack.i.l.bf16 %v4195_v42 }
 0x375   :  { %v4199_v44 = vpop.permute.xlu1 %2378  ;;  %v4201_v57 = vpop.permute.xlu0 %2343  ;;  %1653 = vmatpush.msra.mxu2 %v3920_v19 }
 0x376   :  { %v4703_v26 = vunpack.i.h.bf16 %v4201_v57  ;;  %v4702_v51 = vunpack.i.l.bf16 %v4201_v57  ;;  %v1450_v8 = vsel %vm192_vm6, %v4705_v29, %v2390_v32  ;;  %v4725_v55 = vunpack.i.l.bf16 %v4199_v44 }
 0x377   :  { %1654 = vmatpush.msra.mxu2 %v3903_v48  ;;  %1615 = vmatpush.msra.mxu3 %v1450_v8 }
 0x378   :  { %v4215_v47 = vsel %vm90_vm1, %v2361_v54, %v4703_v26  ;;  %v4221_v19 = vsel %vm90_vm1, %v2360_v9, %v4702_v51  ;;  %v4718_v26 = vunpack.i.h.bf16 %v4166_v49 }
 0x37a   :  { %v1413_v40 = vsel %vm158_vm4, %v4718_v26, %v4723_v6 }
 0x37b   :  { %v4223_v1 = vpop.permute.xlu2 %2393 }
 0x37d   :  { %v4225_v7 = vpop.permute.xlu1 %2383  ;;  %v4227_v50 = vpop.permute.xlu0 %2368 }
 0x37e   :  { %v4709_v48 = vunpack.i.h.bf16 %v4227_v50  ;;  %v2370_v61 = vunpack.i.l.bf16 %v4227_v50  ;;  %v4727_v52 = vunpack.i.h.bf16 %v4225_v7 }
 0x380   :  { %v1449_v54 = vsel %vm192_vm6, %v4709_v48, %v2370_v61  ;;  %v4724_v48 = vunpack.i.h.bf16 %v4199_v44  ;;  %v1342_v6 = vsel %vm90_vm1, %v4727_v52, %v2291_v3 }
 0x381   :  { %1616 = vmatpush.msra.mxu3 %v1449_v54 }
 0x383   :  { %v4235_v8 = vpop.permute.xlu2 %2413 }
 0x385   :  { %v4237_v9 = vpop.permute.xlu1 %2398  ;;  %v4239_v51 = vpop.permute.xlu0 %2403 }
 0x386   :  { %v4715_v29 = vunpack.i.h.bf16 %v4237_v9  ;;  %v2400_v34 = vunpack.i.l.bf16 %v4237_v9  ;;  %v4721_v37 = vunpack.i.h.bf16 %v4239_v51  ;;  %v4722_v17 = vunpack.i.l.bf16 %v4239_v51 }
 0x388   :  { %v1414_v54 = vsel %vm158_vm4, %v4715_v29, %v2400_v34  ;;  %v2365_v29 = vunpack.i.l.bf16 %v4144_v28 }
 0x389   :  { %1617 = vmatpush.msra.mxu3 %v1414_v54  ;;  %v1378_v54 = vsel %vm124_vm0, %v4721_v37, %v4722_v17  ;;  %v1377_v37 = vsel %vm124_vm0, %v4724_v48, %v4725_v55  ;;  %v2366_v17 = vunpack.i.h.bf16 %v4144_v28  ;;  %v4299_v28 = vld.sshfl [vmem:[#allocation1 + $0x8] sm:$0xff pattern:$0x73625140]  ;;  %v2340_v55 = vunpack.i.l.bf16 %v4175_v35 }
 0x38a   :  { %v1590_v3 = vsel %vm328_vm10, %v2316_v10, %v2365_v29 }
 0x38b   :  { %v4259_v0 = vpop.permute.xlu2 %2423  ;;  %1618 = vmatpush.msra.mxu3 %v1413_v40  ;;  %v4726_v40 = vunpack.i.l.bf16 %v4225_v7  ;;  %v1588_v10 = vsel %vm328_vm10, %v2365_v29, %v2366_v17  ;;  %v2351_v29 = vunpack.i.h.bf16 %v4124_v39 }
 0x38c   :  { %v2425_v31 = vunpack.i.l.bf16 %v4259_v0  ;;  %v2426_v60 = vunpack.i.h.bf16 %v4259_v0 }
 0x38d   :  { %v4271_v24 = vpop.permute.xlu1 %2433  ;;  %v4273_v26 = vpop.permute.xlu0 %2408  ;;  %1619 = vmatpush.msra.mxu3 %v1378_v54 }
 0x38e   :  { %v2411_v45 = vunpack.i.h.bf16 %v4273_v26  ;;  %v4728_v2 = vunpack.i.l.bf16 %v4273_v26  ;;  %v1448_v54 = vsel %vm192_vm6, %v2390_v32, %v2425_v31  ;;  %v1447_v32 = vsel %vm192_vm6, %v2370_v61, %v2426_v60 }
 0x38f   :  { %1620 = vmatpush.msra.mxu3 %v1377_v37  ;;  %1655 = vmatpush.msra.mxu2 %v1448_v54  ;;  %v2341_v37 = vunpack.i.h.bf16 %v4175_v35  ;;  %v4317_v35 = vld.sshfl [vmem:[#allocation1] sm:$0xff pattern:$0x73625140] }
 0x390   :  { %v1591_v48 = vsel %vm328_vm10, %v4728_v2, %v2411_v45  ;;  %v1589_v61 = vsel %vm328_vm10, %v2411_v45, %v2340_v55 }
 0x391   :  { %1621 = vmatpush.msra.mxu3 %v1342_v6  ;;  %1642 = vmatpush.msrb.mxu1 %v1591_v48  ;;  %v1341_v6 = vsel %vm90_vm1, %v4726_v40, %v2290_v25  ;;  %v1587_v45 = vsel %vm328_vm10, %v2340_v55, %v2341_v37  ;;  %v1585_v55 = vsel %vm328_vm10, %v2341_v37, %v2351_v29 }
 0x392   :  { %1656 = vmatpush.msra.mxu2 %v1447_v32  ;;  %1907 = vmatmul.msk.f32.vlgmr.msrb.gmra.mxu1 %vm998_vm12, %v4299_v28 }
 0x393   :  { %1681 = vmatpush.msra.mxu1 %v1590_v3  ;;  %v4319_v48 = vpop.permute.xlu2 %2438  ;;  %1622 = vmatpush.msra.mxu3 %v1341_v6  ;;  %v1586_v6 = vsel %vm328_vm10, %v2366_v17, %v2350_v12  ;;  %v4822_v17 = vunpack.i.l.bf16 %v4166_v49 }
 0x394   :  { %v4731_v54 = vunpack.i.l.bf16 %v4319_v48  ;;  %v4730_v25 = vunpack.i.h.bf16 %v4319_v48  ;;  %1623 = vmatmul.f32.vlgmr.msra.gmra.mxu3 %v4317_v35  ;;  %v4839_v0 = vunpack.i.l.bf16 %v4319_v48 }
 0x395   :  { %1682 = vmatpush.msra.mxu1 %v1589_v61  ;;  %1721 = vmatpush.msrb.mxu3 %v1588_v10  ;;  %v4330_v32 = vpop.permute.xlu1 %2448  ;;  %v4332_v3 = vpop.permute.xlu0 %2418 }
 0x396   :  { %v4729_v61 = vunpack.i.l.bf16 %v4330_v32  ;;  %v1412_v10 = vsel %vm158_vm4, %v2400_v34, %v4731_v54  ;;  %v1411_v40 = vsel %vm158_vm4, %v4822_v17, %v4730_v25  ;;  %v4823_v34 = vunpack.i.l.bf16 %v4239_v51 }
 0x397   :  { %1722 = vmatpush.msrb.mxu3 %v1587_v45  ;;  %1657 = vmatpush.msra.mxu2 %v1412_v10  ;;  %v4732_v45 = vunpack.i.h.bf16 %v4330_v32  ;;  %v2356_v17 = vunpack.i.h.bf16 %v4173_v5  ;;  %v4825_v25 = vunpack.i.l.bf16 %v4146_v53 }
 0x398   :  { %v1376_v37 = vsel %vm124_vm0, %v4823_v34, %v4729_v61  ;;  %v2355_v34 = vunpack.i.l.bf16 %v4173_v5 }
 0x399   :  { %1761 = vmatpush.msra.mxu3 %v1586_v6  ;;  %1658 = vmatpush.msra.mxu2 %v1411_v40  ;;  %v4824_v40 = vunpack.i.l.bf16 %v4199_v44 }
 0x39a   :  { %1908 = vmatmul.msk.f32.vlgmr.msra.gmra.mxu1 %vm998_vm12, %v4299_v28 }
 0x39b   :  { %1762 = vmatpush.msra.mxu3 %v1585_v55  ;;  %v4358_v52 = vpop.permute.xlu2 %2453  ;;  %1659 = vmatpush.msra.mxu2 %v1376_v37  ;;  %v1375_v55 = vsel %vm124_vm0, %v4824_v40, %v4732_v45  ;;  %v2396_v37 = vunpack.i.h.bf16 %v4223_v1  ;;  %v2395_v45 = vunpack.i.l.bf16 %v4223_v1 }
 0x39c   :  { %1909 = vmatmul.msk.f32.vlgmr.msrb.gmra.mxu3 %vm998_vm12, %v4299_v28 }
 0x39d   :  { %v2464_v6 = vpop.permute.xlu1 %2463  ;;  %v4368_v10 = vpop.permute.xlu0 %2428  ;;  %1660 = vmatpush.msra.mxu2 %v1375_v55  ;;  %v1549_v1 = vsel %vm294_vm8, %v2355_v34, %v2396_v37 }
 0x39e   :  { %v2466_v2 = vunpack.i.h.bf16 %v2464_v6  ;;  %v2465_v61 = vunpack.i.l.bf16 %v2464_v6  ;;  %v4826_v6 = vunpack.i.h.bf16 %v4146_v53 }
 0x39f   :  { %1661 = vmatpush.msra.mxu2 %v4084_v27 }
 0x3a0   :  { %v1552_v54 = vsel %vm294_vm8, %v4825_v25, %v2465_v61  ;;  %v1550_v40 = vsel %vm294_vm8, %v2465_v61, %v2356_v17  ;;  %v1548_v5 = vsel %vm294_vm8, %v2356_v17, %v2466_v2  ;;  %v1551_v27 = vsel %vm294_vm8, %v4826_v6, %v2355_v34 }
 0x3a1   :  { %1687 = vmatpush.msra.mxu0 %v1552_v54  ;;  %1727 = vmatpush.msrb.mxu1 %v1550_v40  ;;  %v2416_v17 = vunpack.i.h.bf16 %v4235_v8  ;;  %v2415_v40 = vunpack.i.l.bf16 %v4235_v8  ;;  %v2421_v6 = vunpack.i.h.bf16 %v4332_v3 }
 0x3a2   :  { %1662 = vmatpush.msra.mxu2 %v4090_v46  ;;  %v1547_v46 = vsel %vm294_vm8, %v2396_v37, %v2395_v45 }
 0x3a3   :  { %1663 = vmatmul.f32.vlgmr.msra.gmra.mxu2 %v4317_v35  ;;  %1688 = vmatpush.msra.mxu0 %v1551_v27  ;;  %v4397_v25 = vpop.permute.xlu2 %2493  ;;  %v2420_v27 = vunpack.i.l.bf16 %v4332_v3  ;;  %v4828_v3 = vunpack.i.l.bf16 %v4024_v21  ;;  %v1513_v39 = vsel %vm260_vm5, %v2415_v40, %v2421_v6 }
 0x3a4   :  { %1767 = vmatpush.msrb.mxu2 %v1548_v5  ;;  %v2495_v54 = vunpack.i.l.bf16 %v4397_v25  ;;  %1728 = vmatpush.msrb.mxu1 %v1549_v1  ;;  %v2496_v61 = vunpack.i.h.bf16 %v4397_v25  ;;  %v4827_v1 = vunpack.i.l.bf16 %v4126_v62  ;;  %v4852_v25 = vunpack.i.l.bf16 %v4201_v57 }
 0x3a5   :  { %v2469_v53 = vpop.permute.xlu1 %2468  ;;  %v4405_v55 = vpop.permute.xlu0 %2443  ;;  %1910 = vmatmul.msk.f32.vlgmr.msra.gmra.mxu3 %vm998_vm12, %v4299_v28  ;;  %v1511_v21 = vsel %vm260_vm5, %v2421_v6, %v2420_v27  ;;  %v4831_v6 = vunpack.i.l.bf16 %v4066_v14 }
 0x3a6   :  { %1768 = vmatpush.msrb.mxu2 %v1547_v46  ;;  %v2471_v34 = vunpack.i.h.bf16 %v2469_v53  ;;  %v2470_v5 = vunpack.i.l.bf16 %v2469_v53  ;;  %v1584_v37 = vsel %vm328_vm10, %v2350_v12, %v2495_v54  ;;  %v1583_v12 = vsel %vm328_vm10, %v2351_v29, %v2496_v61 }
 0x3a7   :  { %1801 = vmatpush.msrb.mxu3 %v1584_v37  ;;  %v1558_v37 = vsel %vm294_vm8, %v2466_v2, %v4828_v3  ;;  %v4830_v2 = vunpack.i.l.bf16 %v4045_v13  ;;  %v2431_v29 = vunpack.i.h.bf16 %v4368_v10  ;;  %v2436_v13 = vunpack.i.h.bf16 %v4271_v24 }
 0x3a8   :  { %v1516_v8 = vsel %vm260_vm5, %v4827_v1, %v2470_v5  ;;  %v1514_v46 = vsel %vm260_vm5, %v2470_v5, %v2416_v17  ;;  %v1512_v53 = vsel %vm260_vm5, %v2416_v17, %v2471_v34  ;;  %v4829_v5 = vunpack.i.h.bf16 %v4126_v62  ;;  %v1306_v1 = vld [vmem:[%s4641_s9] sm:$0x3] }
 0x3a9   :  { %1689 = vmatpush.msra.mxu0 %v1516_v8  ;;  %1729 = vmatpush.msrb.mxu1 %v1514_v46  ;;  %v1557_v62 = vsel %vm294_vm8, %v2395_v45, %v4830_v2  ;;  %v1522_v3 = vsel %vm260_vm5, %v2471_v34, %v4831_v6  ;;  %v2435_v45 = vunpack.i.l.bf16 %v4271_v24  ;;  %v4836_v2 = vunpack.i.l.bf16 %v4039_v22 }
 0x3aa   :  { %1769 = vmatpush.msrb.mxu2 %v1512_v53  ;;  %1802 = vmatpush.msrb.mxu3 %v1583_v12  ;;  %v1515_v17 = vsel %vm260_vm5, %v4829_v5, %v2415_v40  ;;  %v2430_v53 = vunpack.i.l.bf16 %v4368_v10  ;;  %v4833_v5 = vunpack.i.l.bf16 %v4148_v59 }
 0x3ab   :  { %1690 = vmatpush.msra.mxu0 %v1515_v17  ;;  %1730 = vmatpush.msrb.mxu1 %v1513_v39 }
 0x3ac   :  { %1807 = vmatpush.msra.mxu3 %v1558_v37  ;;  %1770 = vmatpush.msrb.mxu2 %v1511_v21  ;;  %v4832_v37 = vunpack.i.l.bf16 %v4010_v43  ;;  %v4835_v43 = vunpack.i.h.bf16 %v4148_v59  ;;  %v1477_v39 = vsel %vm226_vm3, %v2430_v53, %v2436_v13  ;;  %v2445_v21 = vunpack.i.l.bf16 %v4405_v55 }
 0x3ad   :  { %v2474_v8 = vpop.permute.xlu1 %2473  ;;  %v4453_v46 = vpop.permute.xlu0 %2458  ;;  %1597 = vperm.xlu2 %2512, %v1306_v1   ;;  %1911 = vmatmul.msk.f32.vlgmr.msrb.gmra.mxu3 %vm998_vm12, %v4299_v28  ;;  %v4834_v1 = vunpack.i.l.bf16 %v4101_v56  ;;  %v1475_v56 = vsel %vm226_vm3, %v2436_v13, %v2435_v45  ;;  %v1485_v59 = vsel %vm226_vm3, %v2435_v45, %v4836_v2  ;;  %v4843_v2 = vunpack.i.h.bf16 %v4166_v49 }
 0x3ae   :  { %1808 = vmatpush.msra.mxu3 %v1557_v62  ;;  %v2476_v40 = vunpack.i.h.bf16 %v2474_v8  ;;  %v2475_v12 = vunpack.i.l.bf16 %v2474_v8  ;;  %v1521_v10 = vsel %vm260_vm5, %v2420_v27, %v4832_v37  ;;  %v1479_v27 = vsel %vm226_vm3, %v4835_v43, %v2430_v53 }
 0x3af   :  { %v2446_v62 = vunpack.i.h.bf16 %v4405_v55  ;;  %v2455_v53 = vunpack.i.l.bf16 %v4358_v52  ;;  %v2461_v22 = vunpack.i.h.bf16 %v4453_v46 }
 0x3b0   :  { %1809 = vmatpush.msra.mxu3 %v1522_v3  ;;  %v1480_v14 = vsel %vm226_vm3, %v4833_v5, %v2475_v12  ;;  %v1478_v34 = vsel %vm226_vm3, %v2475_v12, %v2431_v29  ;;  %v1476_v17 = vsel %vm226_vm3, %v2431_v29, %v2476_v40  ;;  %v1486_v24 = vsel %vm226_vm3, %v2476_v40, %v4834_v1 }
 0x3b1   :  { %1691 = vmatpush.msra.mxu0 %v1480_v14  ;;  %1731 = vmatpush.msrb.mxu1 %v1478_v34  ;;  %v2456_v40 = vunpack.i.h.bf16 %v4358_v52  ;;  %v2460_v12 = vunpack.i.l.bf16 %v4453_v46  ;;  %v4841_v34 = vunpack.i.h.bf16 %v4319_v48 }
 0x3b2   :  { %1810 = vmatpush.msra.mxu3 %v1521_v10  ;;  %1771 = vmatpush.msrb.mxu2 %v1476_v17 }
 0x3b3   :  { %1692 = vmatpush.msra.mxu0 %v1479_v27  ;;  %1732 = vmatpush.msrb.mxu1 %v1477_v39  ;;  %v1441_v46 = vsel %vm192_vm6, %v2461_v22, %v2460_v12 }
 0x3b4   :  { %1811 = vmatpush.msra.mxu3 %v1486_v24  ;;  %1772 = vmatpush.msrb.mxu2 %v1475_v56  ;;  %v4842_v56 = vunpack.i.l.bf16 %v4330_v32 }
 0x3b5   :  { %v2479_v29 = vpop.permute.xlu1 %2478  ;;  %v2484_v8 = vpop.permute.xlu0 %2483  ;;  %1693 = vmatpush.msra.mxu0 %v3940_v30  ;;  %1733 = vmatpush.msrb.mxu1 %v3973_v16  ;;  %v1446_v30 = vsel %vm192_vm6, %v2425_v31, %v2445_v21  ;;  %v1445_v31 = vsel %vm192_vm6, %v2426_v60, %v2455_v53 }
 0x3b6   :  { %1812 = vmatpush.msra.mxu3 %v1485_v59  ;;  %1773 = vmatpush.msrb.mxu2 %v3959_v41  ;;  %v2480_v55 = vunpack.i.l.bf16 %v2479_v29  ;;  %v2486_v6 = vunpack.i.h.bf16 %v2484_v8  ;;  %v2499_v41 = vpop.permute.xlu2 %2498  ;;  %v2481_v16 = vunpack.i.h.bf16 %v2479_v29  ;;  %v2485_v52 = vunpack.i.l.bf16 %v2484_v8 }
 0x3b7   :  { %1694 = vmatpush.msra.mxu0 %v3937_v63  ;;  %1734 = vmatpush.msrb.mxu1 %v3962_v20  ;;  %v1444_v63 = vsel %vm192_vm6, %v2445_v21, %v2456_v40  ;;  %v2500_v3 = vunpack.i.l.bf16 %v2499_v41  ;;  %v2501_v39 = vunpack.i.h.bf16 %v2499_v41  ;;  %v4849_v41 = vunpack.i.h.bf16 %v4225_v7 }
 0x3b8   :  { %1813 = vmatpush.msra.mxu3 %v3990_v4  ;;  %1774 = vmatpush.msrb.mxu2 %v3956_v18  ;;  %v1442_v4 = vsel %vm192_vm6, %v2456_v40, %v2446_v62  ;;  %v4837_v18 = vunpack.i.h.bf16 %v4195_v42  ;;  %v4838_v42 = vunpack.i.h.bf16 %v4227_v50  ;;  %v1410_v60 = vsel %vm158_vm4, %v4839_v0, %v2480_v55 }
 0x3b9   :  { %1695 = vmatpush.msra.mxu0 %v1446_v30  ;;  %1735 = vmatpush.msrb.mxu1 %v1444_v63  ;;  %v1408_v45 = vsel %vm158_vm4, %v2480_v55, %v2486_v6  ;;  %v1406_v5 = vsel %vm158_vm4, %v2486_v6, %v2481_v16  ;;  %v4840_v50 = vunpack.i.h.bf16 %v4237_v9  ;;  %v1409_v17 = vsel %vm158_vm4, %v4841_v34, %v2485_v52 }
 0x3ba   :  { %1814 = vmatpush.msra.mxu3 %v3978_v58  ;;  %1775 = vmatpush.msrb.mxu2 %v1442_v4  ;;  %v1440_v20 = vsel %vm192_vm6, %v2446_v62, %v4837_v18  ;;  %v1443_v58 = vsel %vm192_vm6, %v2455_v53, %v2461_v22  ;;  %v1439_v13 = vsel %vm192_vm6, %v2460_v12, %v4838_v42  ;;  %v4844_v62 = vunpack.i.h.bf16 %v4330_v32 }
 0x3bb   :  { %1696 = vmatpush.msra.mxu0 %v1445_v31  ;;  %1736 = vmatpush.msrb.mxu1 %v1443_v58  ;;  %v1404_v14 = vsel %vm158_vm4, %v2481_v16, %v4840_v50  ;;  %v1374_v9 = vsel %vm124_vm0, %v4842_v56, %v2500_v3  ;;  %v4845_v53 = vunpack.i.h.bf16 %v4239_v51  ;;  %v4846_v55 = vunpack.i.l.bf16 %v4041_v23 }
 0x3bc   :  { %1815 = vmatpush.msra.mxu3 %v1440_v20  ;;  %1776 = vmatpush.msrb.mxu2 %v1441_v46  ;;  %v4848_v23 = vunpack.i.l.bf16 %v4273_v26  ;;  %v4851_v26 = vunpack.i.l.bf16 %v4225_v7 }
 0x3bd   :  { %v2489_v37 = vpop.permute.xlu1 %2488  ;;  %v2504_v10 = vpop.permute.xlu0 %2503  ;;  %1697 = vmatpush.msra.mxu0 %v1410_v60  ;;  %1737 = vmatpush.msrb.mxu1 %v1408_v45  ;;  %v1368_v40 = vsel %vm124_vm0, %v2501_v39, %v4845_v53  ;;  %v1594_v51 = vsel %vm328_vm10, %v2495_v54, %v4846_v55 }
 0x3be   :  { %1816 = vmatpush.msra.mxu3 %v1439_v13  ;;  %v2491_v1 = vunpack.i.h.bf16 %v2489_v37  ;;  %v2490_v24 = vunpack.i.l.bf16 %v2489_v37  ;;  %v2506_v43 = vunpack.i.h.bf16 %v2504_v10  ;;  %v2505_v27 = vunpack.i.l.bf16 %v2504_v10  ;;  %1777 = vmatpush.msrb.mxu2 %v1406_v5 }
 0x3bf   :  { %1698 = vmatpush.msra.mxu0 %v1409_v17  ;;  %v1593_v54 = vsel %vm328_vm10, %v2496_v61, %v4848_v23  ;;  %v1331_v61 = vsel %vm90_vm1, %v4852_v25, %v4851_v26  ;;  %v1866_v13 = vstv %s4642_s0 }
 0x3c0   :  { %1817 = vmatpush.msra.mxu3 %v1404_v14  ;;  %v1407_v48 = vsel %vm158_vm4, %v2485_v52, %v2491_v1  ;;  %v1405_v21 = vsel %vm158_vm4, %v2491_v1, %v2490_v24  ;;  %v1403_v59 = vsel %vm158_vm4, %v2490_v24, %v4843_v2  ;;  %v1373_v29 = vsel %vm124_vm0, %v4844_v62, %v2505_v27  ;;  %v4854_v62 = vld [vmem:[#allocation3_spill] sm:$0xff] }
 0x3c1   :  { %1699 = vmatpush.msra.mxu0 %v1374_v9  ;;  %1738 = vmatpush.msrb.mxu1 %v1407_v48  ;;  %v1372_v8 = vsel %vm124_vm0, %v2500_v3, %v2506_v43  ;;  %v1370_v49 = vsel %vm124_vm0, %v2506_v43, %v2501_v39  ;;  %v4853_v43 = vld [vmem:[#allocation4_spill] sm:$0xff]  ;;  %v40_v39 = vld [vmem:[%s4643_s2 + $0x8] sm:$0xf] }
 0x3c2   :  { %1778 = vmatpush.msrb.mxu2 %v1405_v21  ;;  %1818 = vmatpush.msra.mxu3 %v1403_v59  ;;  %v1868_v2 = vmul.f32 %v1866_v13, %v40_v39 }
 0x3c3   :  { %1700 = vmatpush.msra.mxu0 %v1373_v29  ;;  %1739 = vmatpush.msrb.mxu1 %v1372_v8 }
 0x3c4   :  { %1779 = vmatpush.msrb.mxu2 %v1370_v49  ;;  %1819 = vmatpush.msra.mxu3 %v1368_v40 }
 0x3c5   :  { %v2509_v22 = vpop.permute.xlu1 %2508  ;;  %1701 = vmatpush.msra.mxu0 %v4130_v33  ;;  %v4847_v33 = vunpack.i.h.bf16 %v4199_v44  ;;  %v4850_v44 = vunpack.i.h.bf16 %v4201_v57 }
 0x3c6   :  { %v2511_v32 = vunpack.i.h.bf16 %v2509_v22  ;;  %v2510_v12 = vunpack.i.l.bf16 %v2509_v22 }
 0x3c7   :  { %1702 = vmatpush.msra.mxu0 %v4134_v15  ;;  %v1332_v16 = vsel %vm90_vm1, %v4850_v44, %v4849_v41 }
 0x3c8   :  { %1703 = vmatmul.f32.vlgmr.msra.gmra.mxu0 %v4317_v35  ;;  %v1371_v6 = vsel %vm124_vm0, %v2505_v27, %v2511_v32  ;;  %v1369_v30 = vsel %vm124_vm0, %v2511_v32, %v2510_v12  ;;  %v1367_v15 = vsel %vm124_vm0, %v2510_v12, %v4847_v33 }
 0x3c9   :  { %1841 = vmatpush.msrb.mxu0 %v1594_v51  ;;  %1740 = vmatpush.msrb.mxu1 %v1371_v6 }
 0x3ca   :  { %1780 = vmatpush.msrb.mxu2 %v1369_v30  ;;  %1820 = vmatpush.msra.mxu3 %v1367_v15 }
 0x3cb   :  { %1842 = vmatpush.msrb.mxu0 %v1593_v54  ;;  %1741 = vmatpush.msrb.mxu1 %v4138_v38 }
 0x3cc   :  { %1781 = vmatpush.msrb.mxu2 %v4215_v47  ;;  %1821 = vmatpush.msra.mxu3 %v1332_v16 }
 0x3cd   :  { %1742 = vmatpush.msrb.mxu1 %v4142_v36 }
 0x3ce   :  { %1782 = vmatpush.msrb.mxu2 %v4221_v19  ;;  %1822 = vmatpush.msra.mxu3 %v1331_v61 }
 0x3cf   :  { %1743 = vmatmul.f32.vlgmr.msrb.gmra.mxu1 %v4317_v35  ;;  %1783 = vmatmul.f32.vlgmr.msrb.gmra.mxu2 %v4317_v35 }
 0x3d0   :  { %1823 = vmatmul.f32.vlgmr.msra.gmra.mxu3 %v4317_v35  ;;  %1912 = vmatmul.msk.f32.vlgmr.msrb.gmra.mxu0 %vm998_vm12, %v4299_v28  ;;  %v39_v28 = vld [vmem:[%s4643_s2] sm:$0xff] }
 0x3d1   :  { %v1867_v34 = vmul.f32 %v1866_v13, %v39_v28 }
 0x407   :  { %v1598_v11 = vpop.permute.xlu2 %1597 }
 0x40f   :  { %v1644_v47 = vpop.f32.mrf.mxu1 }
 0x417   :  { %v1624_v38 = vpop.f32.mrf.mxu3  ;;  %v1684_v52 = vpop.f32.mrf.mxu1 }
 0x418   :  { %v1625_v58 = vadd.f32 %v1624_v38, %v1598_v11 }
 0x41a   :  { %v1645_v0 = vadd.f32 %v1644_v47, %v1625_v58 }
 0x41f   :  { %v1724_v36 = vpop.f32.mrf.mxu3 }
 0x426   :  { %v1664_v57 = vpop.f32.mrf.mxu2 }
 0x427   :  { %v1665_v4 = vadd.f32 %v1664_v57, %v1598_v11 }
 0x428   :  { %v1764_v7 = vpop.f32.mrf.mxu3 }
 0x429   :  { %v1685_v20 = vadd.f32 %v1684_v52, %v1665_v4 }
 0x42b   :  { %v1853_v35 = vrot.slane %v1685_v20, 6 }
 0x42d   :  { %v1857_v10 = vsel %vm458_vm2, %v1645_v0, %v1853_v35 }
 0x430   :  { %v1804_v18 = vpop.f32.mrf.mxu3 }
 0x445   :  { %v1704_v63 = vpop.f32.mrf.mxu0 }
 0x446   :  { %v1705_v19 = vadd.f32 %v1704_v63, %v1598_v11 }
 0x448   :  { %v1725_v46 = vadd.f32 %v1724_v36, %v1705_v19 }
 0x44a   :  { %v1854_v60 = vrot.slane %v1725_v46, 4 }
 0x44c   :  { %v1744_v31 = vpop.f32.mrf.mxu1 }
 0x44d   :  { %v1745_v3 = vadd.f32 %v1744_v31, %v1598_v11  ;;  %v1844_v14 = vpop.f32.mrf.mxu0 }
 0x44f   :  { %v1765_v42 = vadd.f32 %v1764_v7, %v1745_v3 }
 0x451   :  { %v1855_v45 = vrot.slane %v1765_v42, 2 }
 0x452   :  { %v1784_v37 = vpop.f32.mrf.mxu2 }
 0x453   :  { %v1859_v5 = vsel %vm1858_vm13, %v1854_v60, %v1855_v45  ;;  %v1824_v50 = vpop.f32.mrf.mxu3  ;;  %v1785_v1 = vadd.f32 %v1784_v37, %v1598_v11 }
 0x454   :  { %v1860_v17 = vsel %vm465_vm7, %v1857_v10, %v1859_v5  ;;  %v1825_v24 = vadd.f32 %v1824_v50, %v1598_v11 }
 0x455   :  { %v1864_v27 = vsub.f32 %v4853_v43, %v1860_v17  ;;  %v1805_v48 = vadd.f32 %v1804_v18, %v1785_v1 }
 0x456   :  { %v1845_v56 = vadd.f32 %v1844_v14, %v1825_v24 }
 0x457   :  { %v1869_v9 = vadd.f32 %v1867_v34, %v1864_v27 }
 0x458   :  { %v1856_v21 = vrot.slane %v1845_v56, 6 }
 0x459   :  { %1871 = vst [vmem:[%s4644_s10] sm:$0xff] %v1869_v9 }
 0x45a   :  { %v1861_v59 = vsel %vm458_vm2, %v1805_v48, %v1856_v21 }
 0x45b   :  { %v1865_v29 = vsub.f32 %v4854_v62, %v1861_v59 }
 0x45d   :  { %v1870_v8 = vadd.f32 %v1868_v2, %v1865_v29 }
 0x45f   :  { %1872 = vst [vmem:[%s4644_s10 + $0x8] sm:$0xf] %v1870_v8 }

</bundles_post_ra>
